<compile_context>
chip_gen: v7x
topology: tpu7x:2x2x1
jax: 0.10.0
libtpu: 0.0.40
codegen_flags: <defaults>
</compile_context>

<pallas_src>
import jax
import jax.numpy as jnp
import numpy as np
from jax.experimental import pallas as pl
from jax.experimental.pallas import tpu as pltpu

PATCH = 4                  # patch-embed "conv" kernel & stride
C1 = 64                    # patch-embed channels (PVT-tiny stage-1 width)
FEAT = 512                 # backbone output feature dim (view(-1, 2, 256) => 512)
HID = 512                  # hidden width of both heads
NUM_CLASSES = 3
NUM_BBOX = 4
IN_LANES = 128             # lane-aligned padded input width (>= K + 1)
HALF_LANES = 128           # one 128-lane block per feature half
OUT_LANES = 2 * HALF_LANES # packed output slab width
HID2 = 2 * HID             # both heads' hidden per feature half (1024)
LABEL_COL = NUM_CLASSES + NUM_BBOX   # lane 7 of each half carries the label
MAX_TILE_ROWS = 1024       # row-tile cap (~18 MB VMEM per step incl. hidden)


# ----------------------------------------------------------------------------
# Single fused kernel.  Per row r = image b:
#   h   = relu(x @ W_bh)                (128 -> 2048: backbone + both halves'
#                                        classifier/bbox first layers, biases
#                                        folded into the "ones" lane)
#   out = h @ W2_blockdiag + b2         (2048 -> 256 lane-dense slab)
#   out[:, j*128 + 7] = argmax(out[:, j*128 : j*128+3])   for j in {0, 1}
# Everything stays in VMEM; MXU operands are bf16, accumulation is f32.
# ----------------------------------------------------------------------------
def _fused_kernel(x_ref, wbh_ref, w2_ref, b2_ref, out_ref):
    h = jnp.maximum(
        jnp.dot(x_ref[...], wbh_ref[...], preferred_element_type=jnp.float32),
        0.0)                                                      # (Rt, 2048)
    out = jnp.dot(h.astype(jnp.bfloat16), w2_ref[...],
                  preferred_element_type=jnp.float32) + b2_ref[...]  # (Rt, 256)

    # Per 128-lane half: first-max argmax over the class lanes, packed into
    # lane LABEL_COL.  Slices are 128-lane aligned -> zero-cost, stores are
    # full unmasked vregs.
    for j in range(2):
        o = out[:, j * HALF_LANES:(j + 1) * HALF_LANES]           # (Rt, 128)
        lane = jax.lax.broadcasted_iota(jnp.int32, o.shape, 1)
        cls_masked = jnp.where(lane < NUM_CLASSES, o, -jnp.inf)
        maxv = jnp.max(cls_masked, axis=-1, keepdims=True)
        labels = jnp.min(
            jnp.where(cls_masked == maxv, lane, o.shape[-1]),
            axis=-1, keepdims=True).astype(jnp.float32)           # (Rt, 1)
        out_ref[:, j * HALF_LANES:(j + 1) * HALF_LANES] = jnp.where(
            lane == LABEL_COL, labels, o)


def _fused_pallas(x_in, p):
    R, D = x_in.shape                      # R = batch, D = IN_LANES
    assert D == IN_LANES

    # Pad rows only to a multiple of 8; use >= 2 parallel tiles when there is
    # enough work (v7x has 2 TensorCores), capped at MAX_TILE_ROWS per tile.
    r8 = ((R + 7) // 8) * 8
    if r8 >= 16:
        n_tiles = max(2, (r8 + MAX_TILE_ROWS - 1) // MAX_TILE_ROWS)
    else:
        n_tiles = 1
    rt = (((r8 + n_tiles - 1) // n_tiles + 7) // 8) * 8
    r_pad = rt * n_tiles
    if r_pad != R:
        x_in = jnp.pad(x_in, ((0, r_pad - R), (0, 0)))

    full = lambda a: pl.BlockSpec(a.shape, lambda i: (0, 0))
    out = pl.pallas_call(
        _fused_kernel,
        out_shape=jax.ShapeDtypeStruct((r_pad, OUT_LANES), jnp.float32),
        grid=(n_tiles,),
        in_specs=[
            pl.BlockSpec((rt, IN_LANES), lambda i: (i, 0)),
            full(p["w_bh"]), full(p["w2_big"]), full(p["b2_big"]),
        ],
        out_specs=pl.BlockSpec((rt, OUT_LANES), lambda i: (i, 0)),
        compiler_params=pltpu.CompilerParams(
            dimension_semantics=("parallel",),   # row tiles split across TCs
            vmem_limit_bytes=32 * 1024 * 1024),
    )(x_in, p["w_bh"], p["w2_big"], p["b2_big"])
    return out[:R]


# ----------------------------------------------------------------------------
# Wrapper-side input prep (cheap, no large transpose is ever materialised).
# Pooling first is exact because the patch-embed "conv" and the projection are
# linear and the mean is over the patch axis.  Row layout: [pooled_48 | 1 | 0s]
# padded to 128 lanes, cast to bf16 (half the input HBM stream).
# ----------------------------------------------------------------------------
def _prep_inputs(x_nchw):
    B, C, H, W = x_nchw.shape
    Hp, Wp = H // PATCH, W // PATCH
    K = C * PATCH * PATCH
    assert K + 1 <= IN_LANES
    pooled = x_nchw.reshape(B, C, Hp, PATCH, Wp, PATCH).mean(axis=(2, 4))
    pooled = pooled.reshape(B, K)                               # (B, 48)
    one = jnp.ones((B, 1), jnp.float32)
    pad = jnp.zeros((B, IN_LANES - K - 1), jnp.float32)
    return jnp.concatenate([pooled, one, pad], axis=1).astype(jnp.bfloat16)


def pvt_model_forward(x_nchw, params):
    B = x_nchw.shape[0]
    x_in = _prep_inputs(x_nchw)                                  # (B, 128) bf16
    slab = _fused_pallas(x_in, params)                           # (B, 256) f32
    slab = slab.reshape(B, 2, HALF_LANES)
    cls_logits = slab[:, :, :NUM_CLASSES]                        # (B, 2, 3)
    bbox = slab[:, :, NUM_CLASSES:NUM_CLASSES + NUM_BBOX]        # (B, 2, 4)
    pred_labels = slab[:, :, LABEL_COL].astype(jnp.int32)        # (B, 2)
    return pred_labels, bbox, x_nchw, cls_logits


# ----------------------------------------------------------------------------
# Parameter init (deterministic, synthetic — no checkpoint load).  Raw f32
# weights follow the module's __init__ shapes; the fused/packed bf16 matrices
# the kernel consumes are derived here once (weight fusion done at init).
# ----------------------------------------------------------------------------
def init_params(key, in_ch=3):
    ks = jax.random.split(key, 12)
    K = PATCH * PATCH * in_ch

    def lin(k, fan_in, shape):
        return (jax.random.normal(k, shape, jnp.float32) / np.sqrt(fan_in)
                ).astype(jnp.float32)

    w_patch = lin(ks[0], K, (K, C1));     b_patch = 0.1 * lin(ks[6], C1, (1, C1))
    w_proj = lin(ks[1], C1, (C1, FEAT));  b_proj = 0.1 * lin(ks[7], FEAT, (1, FEAT))
    w1 = lin(ks[2], 256, (256, HID));     b1 = 0.1 * lin(ks[8], HID, (1, HID))
    w2 = lin(ks[3], HID, (HID, NUM_CLASSES))
    b2 = 0.1 * lin(ks[9], NUM_CLASSES, (1, NUM_CLASSES))
    w3 = lin(ks[4], 256, (256, HID));     b3 = 0.1 * lin(ks[10], HID, (1, HID))
    w4 = lin(ks[5], HID, (HID, NUM_BBOX))
    b4 = 0.1 * lin(ks[11], NUM_BBOX, (1, NUM_BBOX))

    # Backbone fusion: feats = pooled @ (Wp @ Wproj) + (bp @ Wproj + bproj).
    wf = w_patch @ w_proj                                   # (K, 512)
    bf = b_patch @ w_proj + b_proj                          # (1, 512)
    w13 = jnp.concatenate([w1, w3], axis=1)                 # (256, 1024)
    b13 = jnp.concatenate([b1, b3], axis=1)                 # (1, 1024)

    # Backbone + both heads' first layers, both feature halves, in ONE matrix.
    # Lanes 0..K-1 = pooled features, lane K = 1.0 (bias), rest zero-padded.
    blocks_w = [wf[:, j * 256:(j + 1) * 256] @ w13 for j in range(2)]   # (K,1024) x2
    blocks_b = [bf[:, j * 256:(j + 1) * 256] @ w13 + b13 for j in range(2)]
    w_bh = jnp.zeros((IN_LANES, 2 * HID2), jnp.float32)     # (128, 2048)
    w_bh = w_bh.at[:K, :].set(jnp.concatenate(blocks_w, axis=1))
    w_bh = w_bh.at[K, :].set(jnp.concatenate(blocks_b, axis=1)[0])
    w_bh = w_bh.astype(jnp.bfloat16)

    # Second layers: block-diagonal, zero-padded to a lane-dense 256-wide slab
    # (half j -> lanes [j*128, j*128+7): cls 0-2, bbox 3-6; lane 7 = label).
    w2_big = jnp.zeros((2 * HID2, OUT_LANES), jnp.float32)  # (2048, 256)
    b2_big = jnp.zeros((1, OUT_LANES), jnp.float32)
    for j in range(2):
        r0, c0 = j * HID2, j * HALF_LANES
        w2_big = w2_big.at[r0:r0 + HID, c0:c0 + NUM_CLASSES].set(w2)
        w2_big = w2_big.at[r0 + HID:r0 + HID2,
                           c0 + NUM_CLASSES:c0 + NUM_CLASSES + NUM_BBOX].set(w4)
        b2_big = b2_big.at[:, c0:c0 + NUM_CLASSES].set(b2)
        b2_big = b2_big.at[:, c0 + NUM_CLASSES:c0 + NUM_CLASSES + NUM_BBOX].set(b4)
    w2_big = w2_big.astype(jnp.bfloat16)

    return dict(
        # raw (original-module layout, f32)
        w_patch=w_patch, b_patch=b_patch, w_proj=w_proj, b_proj=b_proj,
        w1=w1, b1=b1, w2=w2, b2=b2, w3=w3, b3=b3, w4=w4, b4=b4,
        # fused / packed (what the kernel consumes)
        w_bh=w_bh, w2_big=w2_big, b2_big=b2_big,
    )


# ----------------------------------------------------------------------------
# References.
#   _reference_fused : identical math to the kernel (fused bf16 weights) in
#                      plain JAX -> tight tolerance.
#   _reference_f32   : original unfused f32 module math -> loose tolerance
#                      (differences only from bf16 MXU operands / reassociation).
# ----------------------------------------------------------------------------
def _reference_fused(x_nchw, p):
    B = x_nchw.shape[0]
    x_in = _prep_inputs(x_nchw)
    h = jnp.maximum(jnp.dot(x_in, p["w_bh"],
                            preferred_element_type=jnp.float32), 0.0)
    out = jnp.dot(h.astype(jnp.bfloat16), p["w2_big"],
                  preferred_element_type=jnp.float32) + p["b2_big"]
    out = out.reshape(B, 2, HALF_LANES)
    return out[:, :, :NUM_CLASSES], out[:, :, NUM_CLASSES:NUM_CLASSES + NUM_BBOX]


def _reference_f32(x_nchw, p):
    B, C, H, W = x_nchw.shape
    Hp, Wp = H // PATCH, W // PATCH
    K = C * PATCH * PATCH
    patches = x_nchw.reshape(B, C, Hp, PATCH, Wp, PATCH).transpose(
        0, 2, 4, 1, 3, 5).reshape(B, Hp * Wp, K)
    emb = patches @ p["w_patch"] + p["b_patch"]
    feats = emb.mean(axis=1) @ p["w_proj"] + p["b_proj"]
    flat = feats.reshape(-1, 256)                     # == logits.view(-1, 2, 256)
    cls = jnp.maximum(flat @ p["w1"] + p["b1"], 0.0) @ p["w2"] + p["b2"]
    bbx = jnp.maximum(flat @ p["w3"] + p["b3"], 0.0) @ p["w4"] + p["b4"]
    return cls.reshape(B, 2, NUM_CLASSES), bbx.reshape(B, 2, NUM_BBOX)


if __name__ == "__main__":
    B, C, H, W = 2, 3, 32, 32
    x = jax.random.normal(jax.random.PRNGKey(0), (B, C, H, W), jnp.float32)
    params = init_params(jax.random.PRNGKey(1), in_ch=C)

    pred_labels, bbox, x_out, cls_logits = pvt_model_forward(x, params)
    jax.block_until_ready((pred_labels, bbox, x_out, cls_logits))

    assert pred_labels.shape == (B, 2) and pred_labels.dtype == jnp.int32
    assert bbox.shape == (B, 2, NUM_BBOX)
    assert cls_logits.shape == (B, 2, NUM_CLASSES)

    # (1) Pallas kernel vs identical-math plain-JAX reference (tight)
    ref_cls, ref_bbox = _reference_fused(x, params)
    np.testing.assert_allclose(np.asarray(cls_logits), np.asarray(ref_cls),
                               rtol=1e-3, atol=1e-3)
    np.testing.assert_allclose(np.asarray(bbox), np.asarray(ref_bbox),
                               rtol=1e-3, atol=1e-3)
    # in-kernel argmax matches first-max argmax of the returned logits
    np.testing.assert_array_equal(
        np.asarray(pred_labels),
        np.argmax(np.asarray(cls_logits), axis=-1).astype(np.int32))

    # (2) vs original unfused f32 module math (loose: bf16 MXU rounding only)
    f32_cls, f32_bbox = _reference_f32(x, params)
    np.testing.assert_allclose(np.asarray(cls_logits), np.asarray(f32_cls),
                               rtol=1e-2, atol=2e-2)
    np.testing.assert_allclose(np.asarray(bbox), np.asarray(f32_bbox),
                               rtol=1e-2, atol=2e-2)

    print("KERNEL_OK")
</pallas_src>

<mosaic_0001>
module attributes {stable_mosaic.version = 11 : i64} {
  func.func @_fused_kernel(%arg0: i32, %arg1: memref<8x128xbf16, #tpu.memory_space<vmem>>, %arg2: memref<128x2048xbf16, #tpu.memory_space<vmem>>, %arg3: memref<2048x256xbf16, #tpu.memory_space<vmem>>, %arg4: memref<1x256xf32, #tpu.memory_space<vmem>>, %arg5: memref<8x256xf32, #tpu.memory_space<vmem>>) attributes {dimension_semantics = [#tpu.dimension_semantics<parallel>], iteration_bounds = array<i64: 1>, scalar_prefetch = 0 : i64, scratch_operands = 0 : i64, tpu.core_type = #tpu.core_type<tc>, window_params = [{transform_indices = @transform_0, window_bounds = array<i64: 8, 128>}, {pipeline_mode = #tpu.pipeline_mode<synchronous>, transform_indices = @transform_1, window_bounds = array<i64: 128, 2048>}, {pipeline_mode = #tpu.pipeline_mode<synchronous>, transform_indices = @transform_2, window_bounds = array<i64: 2048, 256>}, {pipeline_mode = #tpu.pipeline_mode<synchronous>, transform_indices = @transform_3, window_bounds = array<i64: 1, 256>}, {transform_indices = @transform_4, window_bounds = array<i64: 8, 256>}]} {
    %c0 = arith.constant 0 : index
    %c0_0 = arith.constant 0 : index
    %0 = vector.load %arg1[%c0, %c0_0] : memref<8x128xbf16, #tpu.memory_space<vmem>>, vector<8x128xbf16>
    %c0_1 = arith.constant 0 : index
    %c0_2 = arith.constant 0 : index
    %1 = vector.load %arg2[%c0_1, %c0_2] : memref<128x2048xbf16, #tpu.memory_space<vmem>>, vector<128x2048xbf16>
    %cst = arith.constant dense<0.000000e+00> : vector<8x2048xf32>
    %2 = tpu.matmul %0, %1, %cst {dimension_numbers = #tpu.dot_dimension_numbers<[1], [0], [0], [1], [0, 0, 1, 1], [], []>} : vector<8x128xbf16>, vector<128x2048xbf16>, vector<8x2048xf32> -> vector<8x2048xf32>
    %cst_3 = arith.constant 0.000000e+00 : f32
    %3 = vector.broadcast %cst_3 : f32 to vector<8x2048xf32>
    %4 = arith.maximumf %2, %3 : vector<8x2048xf32>
    %5 = arith.truncf %4 : vector<8x2048xf32> to vector<8x2048xbf16>
    %c0_4 = arith.constant 0 : index
    %c0_5 = arith.constant 0 : index
    %6 = vector.load %arg3[%c0_4, %c0_5] : memref<2048x256xbf16, #tpu.memory_space<vmem>>, vector<2048x256xbf16>
    %cst_6 = arith.constant dense<0.000000e+00> : vector<8x256xf32>
    %7 = tpu.matmul %5, %6, %cst_6 {dimension_numbers = #tpu.dot_dimension_numbers<[1], [0], [0], [1], [0, 0, 1, 1], [], []>} : vector<8x2048xbf16>, vector<2048x256xbf16>, vector<8x256xf32> -> vector<8x256xf32>
    %c0_7 = arith.constant 0 : index
    %c0_8 = arith.constant 0 : index
    %8 = vector.load %arg4[%c0_7, %c0_8] : memref<1x256xf32, #tpu.memory_space<vmem>>, vector<1x256xf32>
    %9 = vector.broadcast %8 : vector<1x256xf32> to vector<8x256xf32>
    %10 = arith.addf %7, %9 : vector<8x256xf32>
    %11 = vector.extract_strided_slice %10 {offsets = [0, 0], sizes = [8, 128], strides = [1, 1]} : vector<8x256xf32> to vector<8x128xf32>
    %12 = tpu.iota {dimensions = array<i32: 1>} : vector<8x128xi32>
    %c3_i32 = arith.constant 3 : i32
    %13 = vector.broadcast %c3_i32 : i32 to vector<8x128xi32>
    %14 = arith.cmpi slt, %12, %13 : vector<8x128xi32>
    %cst_9 = arith.constant 0xFF800000 : f32
    %15 = vector.broadcast %cst_9 : f32 to vector<8x128xf32>
    %16 = arith.select %14, %11, %15 : vector<8x128xi1>, vector<8x128xf32>
    %cst_10 = arith.constant dense<0xFF800000> : vector<8xf32>
    %17 = vector.multi_reduction <maximumf>, %16, %cst_10 [1] : vector<8x128xf32> to vector<8xf32>
    %18 = vector.shape_cast %17 : vector<8xf32> to vector<8x1xf32>
    %19 = vector.broadcast %18 : vector<8x1xf32> to vector<8x128xf32>
    %20 = arith.cmpf oeq, %16, %19 : vector<8x128xf32>
    %c128_i32 = arith.constant 128 : i32
    %21 = vector.broadcast %c128_i32 : i32 to vector<8x128xi32>
    %22 = arith.select %20, %12, %21 : vector<8x128xi1>, vector<8x128xi32>
    %cst_11 = arith.constant dense<2147483647> : vector<8xi32>
    %23 = vector.multi_reduction <minsi>, %22, %cst_11 [1] : vector<8x128xi32> to vector<8xi32>
    %24 = vector.shape_cast %23 : vector<8xi32> to vector<8x1xi32>
    %25 = arith.sitofp %24 : vector<8x1xi32> to vector<8x1xf32>
    %c7_i32 = arith.constant 7 : i32
    %26 = vector.broadcast %c7_i32 : i32 to vector<8x128xi32>
    %27 = arith.cmpi eq, %12, %26 : vector<8x128xi32>
    %28 = vector.shape_cast %25 : vector<8x1xf32> to vector<8x1xf32>
    %29 = vector.broadcast %28 : vector<8x1xf32> to vector<8x128xf32>
    %30 = arith.select %27, %29, %11 : vector<8x128xi1>, vector<8x128xf32>
    %c0_12 = arith.constant 0 : index
    %c0_13 = arith.constant 0 : index
    %31 = vector.load %arg5[%c0_12, %c0_13] : memref<8x256xf32, #tpu.memory_space<vmem>>, vector<8x128xf32>
    tpu.vector_store %arg5[%c0_12, %c0_13], %30 {strides = array<i32>} : memref<8x256xf32, #tpu.memory_space<vmem>>, vector<8x128xf32>,
    %32 = vector.extract_strided_slice %10 {offsets = [0, 128], sizes = [8, 128], strides = [1, 1]} : vector<8x256xf32> to vector<8x128xf32>
    %33 = tpu.iota {dimensions = array<i32: 1>} : vector<8x128xi32>
    %c3_i32_14 = arith.constant 3 : i32
    %34 = vector.broadcast %c3_i32_14 : i32 to vector<8x128xi32>
    %35 = arith.cmpi slt, %33, %34 : vector<8x128xi32>
    %cst_15 = arith.constant 0xFF800000 : f32
    %36 = vector.broadcast %cst_15 : f32 to vector<8x128xf32>
    %37 = arith.select %35, %32, %36 : vector<8x128xi1>, vector<8x128xf32>
    %cst_16 = arith.constant dense<0xFF800000> : vector<8xf32>
    %38 = vector.multi_reduction <maximumf>, %37, %cst_16 [1] : vector<8x128xf32> to vector<8xf32>
    %39 = vector.shape_cast %38 : vector<8xf32> to vector<8x1xf32>
    %40 = vector.broadcast %39 : vector<8x1xf32> to vector<8x128xf32>
    %41 = arith.cmpf oeq, %37, %40 : vector<8x128xf32>
    %c128_i32_17 = arith.constant 128 : i32
    %42 = vector.broadcast %c128_i32_17 : i32 to vector<8x128xi32>
    %43 = arith.select %41, %33, %42 : vector<8x128xi1>, vector<8x128xi32>
    %cst_18 = arith.constant dense<2147483647> : vector<8xi32>
    %44 = vector.multi_reduction <minsi>, %43, %cst_18 [1] : vector<8x128xi32> to vector<8xi32>
    %45 = vector.shape_cast %44 : vector<8xi32> to vector<8x1xi32>
    %46 = arith.sitofp %45 : vector<8x1xi32> to vector<8x1xf32>
    %c7_i32_19 = arith.constant 7 : i32
    %47 = vector.broadcast %c7_i32_19 : i32 to vector<8x128xi32>
    %48 = arith.cmpi eq, %33, %47 : vector<8x128xi32>
    %49 = vector.shape_cast %46 : vector<8x1xf32> to vector<8x1xf32>
    %50 = vector.broadcast %49 : vector<8x1xf32> to vector<8x128xf32>
    %51 = arith.select %48, %50, %32 : vector<8x128xi1>, vector<8x128xf32>
    %c0_20 = arith.constant 0 : index
    %c128 = arith.constant 128 : index
    %52 = vector.load %arg5[%c0_20, %c128] : memref<8x256xf32, #tpu.memory_space<vmem>>, vector<8x128xf32>
    tpu.vector_store %arg5[%c0_20, %c128], %51 {strides = array<i32>} : memref<8x256xf32, #tpu.memory_space<vmem>>, vector<8x128xf32>,
    return
  }
  func.func @transform_0(%arg0: i32) -> (i32, i32) {
    %c0_i32 = arith.constant 0 : i32
    %c0_i32_0 = arith.constant 0 : i32
    return %arg0, %c0_i32 : i32, i32
  }
  func.func @transform_1(%arg0: i32) -> (i32, i32) {
    %c0_i32 = arith.constant 0 : i32
    %c0_i32_0 = arith.constant 0 : i32
    %c0_i32_1 = arith.constant 0 : i32
    return %c0_i32, %c0_i32_0 : i32, i32
  }
  func.func @transform_2(%arg0: i32) -> (i32, i32) {
    %c0_i32 = arith.constant 0 : i32
    %c0_i32_0 = arith.constant 0 : i32
    %c0_i32_1 = arith.constant 0 : i32
    return %c0_i32, %c0_i32_0 : i32, i32
  }
  func.func @transform_3(%arg0: i32) -> (i32, i32) {
    %c0_i32 = arith.constant 0 : i32
    %c0_i32_0 = arith.constant 0 : i32
    %c0_i32_1 = arith.constant 0 : i32
    return %c0_i32, %c0_i32_0 : i32, i32
  }
  func.func @transform_4(%arg0: i32) -> (i32, i32) {
    %c0_i32 = arith.constant 0 : i32
    %c0_i32_0 = arith.constant 0 : i32
    return %arg0, %c0_i32 : i32, i32
  }
}

</mosaic_0001>

<bundles_post_ra>
// kernel: tpu_custom_call.1
= control target key start
LH: loop header
LB: loop body
LE: loop exit
PB: predicated region body
PF: predicated region fallthrough
CT: control target
= control target key end

     0   :  { %9 = vsyncpa [#allocation3], 0  ;;  %s4155_s0 = inlined_call_operand.hbm [shape: bf16[8,128], index: 0, kind: input, shape index: {}]   ;;  %s4156_s1 = inlined_call_operand.hbm [shape: bf16[128,2048], index: 1, kind: input, shape index: {}]   ;;  %s4157_s2 = inlined_call_operand.hbm [shape: bf16[2048,256], index: 2, kind: input, shape index: {}]   ;;  %s4158_s3 = inlined_call_operand.vmem [shape: f32[1,256], index: 3, kind: input, shape index: {}]   ;;  %s4159_s4 = inlined_call_operand.hbm [shape: f32[8,256], index: 4, kind: output, shape index: {}]  }
   0x1   :  { %10 = vsyncpa [#allocation6], 0 }
   0x2   :  { %11 = vsyncpa [#allocation4], 0  ;;  %s4027_s15 = smov [#allocation5]   ;;  %s3933_s19 = scalar_lea.hbm %s4156_s1, 16384 }
   0x3   :  { %s27_s16 = sshll.u32 %s4027_s15, 4  ;;  %p3934_p0 = scmp.ne.s32.totalorder %s4156_s1, %s3933_s19  ;;  %s28_s16 = int_to_ptr.vmem [resolvable:$true] %s27_s16 }
   0x4   :  { %p3937_p1 = scmp.lt.u32.totalorder %s3933_s19, %s4156_s1 }
   0x6   :  { %p3939_p2 = pnand %p3937_p1, %p3934_p0 }
   0x8   :  { %3942 = shalt.err (!%p3939_p2)
}
   0x9   :  { %s3943_s24 = scalar_lea.vmem %s28_s16, 16384  ;;  %p3948_p4 = scmp.lt.s32.totalorder %s28_s16, %s28_s16 }
   0xa   :  { %p3944_p3 = scmp.ne.s32.totalorder %s28_s16, %s3943_s24  ;;  %p3949_p5 = scmp.lt.s32.totalorder %s3943_s24, %s3943_s24 }
   0xc   :  { %p3950_p6 = por %p3949_p5, %p3948_p4 }
   0xe   :  { %p3951_p7 = pnand %p3950_p6, %p3944_p3 }
  0x10   :  { %3954 = shalt.err (!%p3951_p7)
}
  0x11   :  { %s4028_s25 = smov 1024   ;;  %s4029_s26 = smov 64  }
  0x12   :  { %33 = dma.hbm_to_vmem [thread:$0]  %s4156_s1, 16384, %s28_s16, [#allocation6], %s4028_s25, %s4028_s25, %s4029_s26  }
  0x13   :  { %s4030_s29 = smov [#allocation2]   ;;  %s4031_s5 = smov [#allocation7]  }
  0x14   :  { %s18_s30 = sshll.u32 %s4030_s29, 4  ;;  %s39_s6 = sshll.u32 %s4031_s5, 4  ;;  %s19_s30 = int_to_ptr.vmem [resolvable:$true] %s18_s30  ;;  %s40_s6 = int_to_ptr.vmem [resolvable:$true] %s39_s6 }
  0x15   :  { %s3955_s9 = scalar_lea.hbm %s4155_s0, 64 }
  0x16   :  { %p3956_p8 = scmp.ne.s32.totalorder %s4155_s0, %s3955_s9  ;;  %p3959_p9 = scmp.lt.u32.totalorder %s3955_s9, %s4155_s0 }
  0x18   :  { %p3961_p10 = pnand %p3959_p9, %p3956_p8 }
  0x1a   :  { %3964 = shalt.err (!%p3961_p10)
}
  0x1b   :  { %s3965_s1 = scalar_lea.vmem %s19_s30, 64  ;;  %p3970_p12 = scmp.lt.s32.totalorder %s19_s30, %s19_s30 }
  0x1c   :  { %p3966_p11 = scmp.ne.s32.totalorder %s19_s30, %s3965_s1  ;;  %p3971_p13 = scmp.lt.s32.totalorder %s3965_s1, %s3965_s1 }
  0x1e   :  { %p3972_p0 = por %p3971_p13, %p3970_p12 }
  0x20   :  { %p3973_p1 = pnand %p3972_p0, %p3966_p11 }
  0x22   :  { %3976 = shalt.err (!%p3973_p1)
}
  0x23   :  { %21 = dma.hbm_to_vmem [thread:$0]  %s4155_s0, 64, %s19_s30, [#allocation3]  }
  0x24   :  { %s3977_s18 = scalar_lea.hbm %s4157_s2, 32768 }
  0x25   :  { %p3978_p2 = scmp.ne.s32.totalorder %s4157_s2, %s3977_s18  ;;  %p3981_p3 = scmp.lt.u32.totalorder %s3977_s18, %s4157_s2 }
  0x27   :  { %p3983_p4 = pnand %p3981_p3, %p3978_p2 }
  0x29   :  { %3986 = shalt.err (!%p3983_p4)
}
  0x2a   :  { %s3987_s23 = scalar_lea.vmem %s40_s6, 32768  ;;  %p3992_p6 = scmp.lt.s32.totalorder %s40_s6, %s40_s6 }
  0x2b   :  { %p3988_p5 = scmp.ne.s32.totalorder %s40_s6, %s3987_s23  ;;  %p3993_p7 = scmp.lt.s32.totalorder %s3987_s23, %s3987_s23 }
  0x2d   :  { %p3994_p8 = por %p3993_p7, %p3992_p6 }
  0x2f   :  { %p3995_p9 = pnand %p3994_p8, %p3988_p5 }
  0x31   :  { %3998 = shalt.err (!%p3995_p9)
}
  0x32   :  { %s4032_s0 = smov 128   ;;  %s4033_s24 = smov 8  }
  0x33   :  { %45 = dma.hbm_to_vmem [thread:$0]  %s4157_s2, 32768, %s40_s6, [#allocation6], %s4032_s0, %s4032_s0, %s4033_s24  }
  0x34   :  { %4021 = dma.done.wait [#allocation3], 64  }
  0x35   :  { %4022 = vsyncadd [#allocation3], 4294967232 }
  0x36   :  { %4023 = dma.done.wait [#allocation6], 49152  }
  0x37   :  { %4024 = vsyncadd [#allocation6], 4294918144  ;;  %v4034_v0 = vmov 0   ;;  %v59_v1 = vld [vmem:[#allocation5] sm:$0xff]  ;;  %v60_v18 = vld [vmem:[#allocation5 + $0x8] sm:$0xff] }
  0x38   :  { %859 = vmatprep.mubr.bf16.mxu0 %v4034_v0  ;;  %900 = vmatprep.mubr.bf16.mxu1 %v4034_v0  ;;  %v67_v2 = vld [vmem:[#allocation5 + $0x40] sm:$0xff]  ;;  %v68_v19 = vld [vmem:[#allocation5 + $0x48] sm:$0xff]  ;;  %v61_v53 = vld [vmem:[#allocation5 + $0x10] sm:$0xff] }
  0x39   :  { %v75_v3 = vld [vmem:[#allocation5 + $0x80] sm:$0xff]  ;;  %v3128_v4 = vcombine.high %v59_v1, %v67_v2  ;;  %v3127_v5 = vcombine.low %v59_v1, %v67_v2  ;;  %v3130_v20 = vcombine.high %v60_v18, %v68_v19  ;;  %v3129_v21 = vcombine.low %v60_v18, %v68_v19  ;;  %v76_v22 = vld [vmem:[#allocation5 + $0x88] sm:$0xff]  ;;  %v69_v54 = vld [vmem:[#allocation5 + $0x50] sm:$0xff] }
  0x3a   :  { %v83_v6 = vld [vmem:[#allocation5 + $0xc0] sm:$0xff]  ;;  %v84_v24 = vld [vmem:[#allocation5 + $0xc8] sm:$0xff]  ;;  %v3132_v60 = vcombine.high %v61_v53, %v69_v54  ;;  %v77_v61 = vld [vmem:[#allocation5 + $0x90] sm:$0xff] }
  0x3b   :  { %v3144_v7 = vcombine.high %v75_v3, %v83_v6  ;;  %v91_v8 = vld [vmem:[#allocation5 + $0x100] sm:$0xff]  ;;  %827 = vmatprep.subr.bf16.mxu0 %v3128_v4  ;;  %v3143_v10 = vcombine.low %v75_v3, %v83_v6  ;;  %868 = vmatprep.subr.bf16.mxu1 %v3130_v20  ;;  %v3146_v26 = vcombine.high %v76_v22, %v84_v24  ;;  %v92_v27 = vld [vmem:[#allocation5 + $0x108] sm:$0xff]  ;;  %v85_v62 = vld [vmem:[#allocation5 + $0xd0] sm:$0xff] }
  0x3c   :  { %v99_v9 = vld [vmem:[#allocation5 + $0x140] sm:$0xff]  ;;  %828 = vmatpush1.bf16.msra.mxu0 %v3127_v5  ;;  %v100_v28 = vld [vmem:[#allocation5 + $0x148] sm:$0xff]  ;;  %869 = vmatpush1.bf16.msra.mxu1 %v3129_v21  ;;  %v3145_v31 = vcombine.low %v76_v22, %v84_v24  ;;  %v4099_v2 = vld [vmem:[#allocation2] sm:$0xf]  ;;  %v3131_v3 = vcombine.low %v61_v53, %v69_v54  ;;  %v3148_v6 = vcombine.high %v77_v61, %v85_v62 }
  0x3d   :  { %829 = vmatprep.subr.bf16.mxu0 %v3144_v7  ;;  %v3160_v11 = vcombine.high %v91_v8, %v99_v9  ;;  %v107_v12 = vld [vmem:[#allocation5 + $0x180] sm:$0xff]  ;;  %v3159_v14 = vcombine.low %v91_v8, %v99_v9  ;;  %870 = vmatprep.subr.bf16.mxu1 %v3146_v26  ;;  %v3162_v32 = vcombine.high %v92_v27, %v100_v28  ;;  %v108_v34 = vld [vmem:[#allocation5 + $0x188] sm:$0xff]  ;;  %v93_v7 = vld [vmem:[#allocation5 + $0x110] sm:$0xff] }
  0x3e   :  { %v115_v13 = vld [vmem:[#allocation5 + $0x1c0] sm:$0xff]  ;;  %v116_v35 = vld [vmem:[#allocation5 + $0x1c8] sm:$0xff]  ;;  %v3161_v39 = vcombine.low %v92_v27, %v100_v28  ;;  %v101_v8 = vld [vmem:[#allocation5 + $0x150] sm:$0xff] }
  0x3f   :  { %v3176_v15 = vcombine.high %v107_v12, %v115_v13  ;;  %v123_v16 = vld [vmem:[#allocation5 + $0x200] sm:$0xff]  ;;  %v3175_v23 = vcombine.low %v107_v12, %v115_v13  ;;  %v3178_v40 = vcombine.high %v108_v34, %v116_v35  ;;  %v124_v42 = vld [vmem:[#allocation5 + $0x208] sm:$0xff]  ;;  %v3177_v47 = vcombine.low %v108_v34, %v116_v35  ;;  %v62_v12 = vld [vmem:[#allocation5 + $0x18] sm:$0xff] }
  0x40   :  { %830 = vmatpush1.bf16.msra.mxu0 %v3143_v10  ;;  %v131_v17 = vld [vmem:[#allocation5 + $0x240] sm:$0xff]  ;;  %871 = vmatpush1.bf16.msra.mxu1 %v3145_v31  ;;  %v132_v43 = vld [vmem:[#allocation5 + $0x248] sm:$0xff]  ;;  %v70_v13 = vld [vmem:[#allocation5 + $0x58] sm:$0xff]  ;;  %v3163_v19 = vcombine.low %v93_v7, %v101_v8 }
  0x41   :  { %831 = vmatprep.subr.bf16.mxu0 %v3160_v11  ;;  %v3192_v25 = vcombine.high %v123_v16, %v131_v17  ;;  %v139_v29 = vld [vmem:[#allocation5 + $0x280] sm:$0xff]  ;;  %v3191_v33 = vcombine.low %v123_v16, %v131_v17  ;;  %872 = vmatprep.subr.bf16.mxu1 %v3162_v32  ;;  %v3194_v48 = vcombine.high %v124_v42, %v132_v43  ;;  %v140_v50 = vld [vmem:[#allocation5 + $0x288] sm:$0xff]  ;;  %v117_v16 = vld [vmem:[#allocation5 + $0x1d0] sm:$0xff] }
  0x42   :  { %v147_v30 = vld [vmem:[#allocation5 + $0x2c0] sm:$0xff]  ;;  %v148_v51 = vld [vmem:[#allocation5 + $0x2c8] sm:$0xff]  ;;  %v3193_v55 = vcombine.low %v124_v42, %v132_v43  ;;  %v3147_v11 = vcombine.low %v77_v61, %v85_v62  ;;  %v3134_v18 = vcombine.high %v62_v12, %v70_v13  ;;  %v78_v20 = vld [vmem:[#allocation5 + $0x98] sm:$0xff] }
  0x43   :  { %v3208_v36 = vcombine.high %v139_v29, %v147_v30  ;;  %v155_v37 = vld [vmem:[#allocation5 + $0x300] sm:$0xff]  ;;  %v3207_v41 = vcombine.low %v139_v29, %v147_v30  ;;  %v3210_v56 = vcombine.high %v140_v50, %v148_v51  ;;  %v156_v58 = vld [vmem:[#allocation5 + $0x308] sm:$0xff]  ;;  %v3209_v63 = vcombine.low %v140_v50, %v148_v51  ;;  %v86_v21 = vld [vmem:[#allocation5 + $0xd8] sm:$0xff] }
  0x44   :  { %832 = vmatpush1.bf16.msra.mxu0 %v3159_v14  ;;  %v163_v38 = vld [vmem:[#allocation5 + $0x340] sm:$0xff]  ;;  %873 = vmatpush1.bf16.msra.mxu1 %v3161_v39  ;;  %v164_v59 = vld [vmem:[#allocation5 + $0x348] sm:$0xff]  ;;  %v3164_v14 = vcombine.high %v93_v7, %v101_v8  ;;  %v133_v24 = vld [vmem:[#allocation5 + $0x250] sm:$0xff]  ;;  %v3150_v26 = vcombine.high %v78_v20, %v86_v21 }
  0x45   :  { %833 = vmatprep.subr.bf16.mxu0 %v3176_v15  ;;  %v3224_v44 = vcombine.high %v155_v37, %v163_v38  ;;  %v171_v45 = vld [vmem:[#allocation5 + $0x380] sm:$0xff]  ;;  %874 = vmatprep.subr.bf16.mxu1 %v3178_v40  ;;  %v3223_v49 = vcombine.low %v155_v37, %v163_v38  ;;  %v3226_v1 = vcombine.high %v156_v58, %v164_v59  ;;  %v172_v4 = vld [vmem:[#allocation5 + $0x388] sm:$0xff]  ;;  %v109_v15 = vld [vmem:[#allocation5 + $0x190] sm:$0xff] }
  0x46   :  { %v179_v46 = vld [vmem:[#allocation5 + $0x3c0] sm:$0xff]  ;;  %v180_v5 = vld [vmem:[#allocation5 + $0x3c8] sm:$0xff]  ;;  %v3225_v9 = vcombine.low %v156_v58, %v164_v59  ;;  %v3180_v22 = vcombine.high %v109_v15, %v117_v16  ;;  %v3179_v27 = vcombine.low %v109_v15, %v117_v16  ;;  %v94_v28 = vld [vmem:[#allocation5 + $0x118] sm:$0xff] }
  0x47   :  { %v3240_v52 = vcombine.high %v171_v45, %v179_v46  ;;  %v3239_v57 = vcombine.low %v171_v45, %v179_v46  ;;  %v3242_v10 = vcombine.high %v172_v4, %v180_v5  ;;  %v3241_v17 = vcombine.low %v172_v4, %v180_v5  ;;  %v102_v29 = vld [vmem:[#allocation5 + $0x158] sm:$0xff]  ;;  %v141_v31 = vld [vmem:[#allocation5 + $0x290] sm:$0xff]  ;;  %v79_v61 = vld [vmem:[#allocation5 + $0xa0] sm:$0xff] }
  0x48   :  { %834 = vmatpush1.bf16.msra.mxu0 %v3175_v23  ;;  %875 = vmatpush1.bf16.msra.mxu1 %v3177_v47  ;;  %v125_v23 = vld [vmem:[#allocation5 + $0x210] sm:$0xff]  ;;  %v3166_v34 = vcombine.high %v94_v28, %v102_v29  ;;  %v118_v37 = vld [vmem:[#allocation5 + $0x1d8] sm:$0xff]  ;;  %v87_v62 = vld [vmem:[#allocation5 + $0xe0] sm:$0xff] }
  0x49   :  { %835 = vmatprep.subr.bf16.mxu0 %v3192_v25  ;;  %876 = vmatprep.subr.bf16.mxu1 %v3194_v48  ;;  %v3133_v25 = vcombine.low %v62_v12, %v70_v13  ;;  %v3196_v30 = vcombine.high %v125_v23, %v133_v24  ;;  %v149_v32 = vld [vmem:[#allocation5 + $0x2d0] sm:$0xff]  ;;  %v3195_v35 = vcombine.low %v125_v23, %v133_v24  ;;  %v134_v45 = vld [vmem:[#allocation5 + $0x258] sm:$0xff]  ;;  %v95_v8 = vld [vmem:[#allocation5 + $0x120] sm:$0xff] }
  0x4a   :  { %v3212_v38 = vcombine.high %v141_v31, %v149_v32  ;;  %v157_v39 = vld [vmem:[#allocation5 + $0x310] sm:$0xff]  ;;  %v3211_v43 = vcombine.low %v141_v31, %v149_v32  ;;  %v142_v51 = vld [vmem:[#allocation5 + $0x298] sm:$0xff]  ;;  %v64_v12 = vld [vmem:[#allocation5 + $0x28] sm:$0xff]  ;;  %v3151_v15 = vcombine.low %v79_v61, %v87_v62 }
  0x4b   :  { %v165_v40 = vld [vmem:[#allocation5 + $0x350] sm:$0xff]  ;;  %v150_v53 = vld [vmem:[#allocation5 + $0x2d8] sm:$0xff]  ;;  %v72_v13 = vld [vmem:[#allocation5 + $0x68] sm:$0xff] }
  0x4c   :  { %836 = vmatpush1.bf16.msra.mxu0 %v3191_v33  ;;  %877 = vmatpush1.bf16.msra.mxu1 %v3193_v55  ;;  %v3149_v33 = vcombine.low %v78_v20, %v86_v21  ;;  %v3228_v46 = vcombine.high %v157_v39, %v165_v40  ;;  %v173_v47 = vld [vmem:[#allocation5 + $0x390] sm:$0xff]  ;;  %v63_v55 = vld [vmem:[#allocation5 + $0x20] sm:$0xff]  ;;  %v3214_v58 = vcombine.high %v142_v51, %v150_v53  ;;  %v158_v59 = vld [vmem:[#allocation5 + $0x318] sm:$0xff] }
  0x4d   :  { %837 = vmatprep.subr.bf16.mxu0 %v3208_v36  ;;  %878 = vmatprep.subr.bf16.mxu1 %v3210_v56  ;;  %v110_v36 = vld [vmem:[#allocation5 + $0x198] sm:$0xff]  ;;  %v181_v48 = vld [vmem:[#allocation5 + $0x3d0] sm:$0xff]  ;;  %v71_v56 = vld [vmem:[#allocation5 + $0x60] sm:$0xff] }
  0x4e   :  { %v3182_v42 = vcombine.high %v110_v36, %v118_v37  ;;  %v3244_v54 = vcombine.high %v173_v47, %v181_v48  ;;  %v174_v4 = vld [vmem:[#allocation5 + $0x398] sm:$0xff]  ;;  %v3135_v7 = vcombine.low %v63_v55, %v71_v56  ;;  %v111_v16 = vld [vmem:[#allocation5 + $0x1a0] sm:$0xff]  ;;  %v80_v20 = vld [vmem:[#allocation5 + $0xa8] sm:$0xff] }
  0x4f   :  { %v182_v5 = vld [vmem:[#allocation5 + $0x3d8] sm:$0xff]  ;;  %v88_v21 = vld [vmem:[#allocation5 + $0xe8] sm:$0xff]  ;;  %v127_v24 = vld [vmem:[#allocation5 + $0x220] sm:$0xff] }
  0x50   :  { %838 = vmatpush1.bf16.msra.mxu0 %v3207_v41  ;;  %879 = vmatpush1.bf16.msra.mxu1 %v3209_v63  ;;  %v3165_v41 = vcombine.low %v94_v28, %v102_v29  ;;  %v166_v63 = vld [vmem:[#allocation5 + $0x358] sm:$0xff]  ;;  %v96_v28 = vld [vmem:[#allocation5 + $0x128] sm:$0xff]  ;;  %v143_v32 = vld [vmem:[#allocation5 + $0x2a0] sm:$0xff] }
  0x51   :  { %839 = vmatprep.subr.bf16.mxu0 %v3224_v44  ;;  %880 = vmatprep.subr.bf16.mxu1 %v3226_v1  ;;  %v126_v44 = vld [vmem:[#allocation5 + $0x218] sm:$0xff]  ;;  %v3136_v1 = vcombine.high %v63_v55, %v71_v56  ;;  %v104_v29 = vld [vmem:[#allocation5 + $0x168] sm:$0xff]  ;;  %v65_v56 = vld [vmem:[#allocation5 + $0x30] sm:$0xff] }
  0x52   :  { %v3198_v50 = vcombine.high %v126_v44, %v134_v45 }
  0x54   :  { %840 = vmatpush1.bf16.msra.mxu0 %v3223_v49  ;;  %881 = vmatpush1.bf16.msra.mxu1 %v3225_v9  ;;  %v3181_v49 = vcombine.low %v110_v36, %v118_v37  ;;  %v103_v9 = vld [vmem:[#allocation5 + $0x160] sm:$0xff]  ;;  %v112_v36 = vld [vmem:[#allocation5 + $0x1a8] sm:$0xff] }
  0x55   :  { %841 = vmatprep.subr.bf16.mxu0 %v3240_v52  ;;  %882 = vmatprep.subr.bf16.mxu1 %v3242_v10  ;;  %v3227_v52 = vcombine.low %v157_v39, %v165_v40  ;;  %v3152_v10 = vcombine.high %v79_v61, %v87_v62  ;;  %v3167_v23 = vcombine.low %v95_v8, %v103_v9  ;;  %v120_v37 = vld [vmem:[#allocation5 + $0x1e8] sm:$0xff]  ;;  %v159_v40 = vld [vmem:[#allocation5 + $0x320] sm:$0xff] }
  0x56   :  { %v168_v61 = vld [vmem:[#allocation5 + $0x368] sm:$0xff] }
  0x58   :  { %842 = vmatpush1.bf16.msra.mxu0 %v3239_v57  ;;  %883 = vmatpush1.bf16.msra.mxu1 %v3241_v17  ;;  %v3197_v57 = vcombine.low %v126_v44, %v134_v45  ;;  %v119_v17 = vld [vmem:[#allocation5 + $0x1e0] sm:$0xff]  ;;  %v128_v44 = vld [vmem:[#allocation5 + $0x228] sm:$0xff] }
  0x59   :  { %909 = vmatprep.subr.bf16.mxu0 %v3132_v60  ;;  %950 = vmatprep.subr.bf16.mxu1 %v3134_v18  ;;  %v3243_v60 = vcombine.low %v173_v47, %v181_v48  ;;  %v3168_v18 = vcombine.high %v95_v8, %v103_v9  ;;  %v3183_v31 = vcombine.low %v111_v16, %v119_v17  ;;  %v136_v45 = vld [vmem:[#allocation5 + $0x268] sm:$0xff]  ;;  %v175_v48 = vld [vmem:[#allocation5 + $0x3a0] sm:$0xff] }
  0x5b   :  { %860 = vmatmul.mubr.bf16.vlgmr.msra.gmra.mrb[0].mxu0 %v4099_v2  ;;  %901 = vmatmul.mubr.bf16.vlgmr.msra.gmra.mrb[0].mxu1 %v4099_v2 }
  0x5c   :  { %910 = vmatpush1.bf16.msra.mxu0 %v3131_v3  ;;  %941 = vmatprep.mubr.bf16.mxu0 %v4034_v0  ;;  %v3213_v3 = vcombine.low %v142_v51, %v150_v53  ;;  %v3185_v51 = vcombine.low %v112_v36, %v120_v37  ;;  %v152_v53 = vld [vmem:[#allocation5 + $0x2e8] sm:$0xff] }
  0x5d   :  { %911 = vmatprep.subr.bf16.mxu0 %v3148_v6  ;;  %951 = vmatpush1.bf16.msra.mxu1 %v3133_v25  ;;  %v3230_v6 = vcombine.high %v158_v59, %v166_v63  ;;  %v135_v25 = vld [vmem:[#allocation5 + $0x260] sm:$0xff] }
  0x5e   :  { %982 = vmatprep.mubr.bf16.mxu1 %v4034_v0  ;;  %952 = vmatprep.subr.bf16.mxu1 %v3150_v26  ;;  %v3184_v26 = vcombine.high %v111_v16, %v119_v17  ;;  %v3199_v39 = vcombine.low %v127_v24, %v135_v25 }
  0x60   :  { %912 = vmatpush1.bf16.msra.mxu0 %v3147_v11  ;;  %v3229_v11 = vcombine.low %v158_v59, %v166_v63  ;;  %v3201_v59 = vcombine.low %v128_v44, %v136_v45 }
  0x61   :  { %913 = vmatprep.subr.bf16.mxu0 %v3164_v14  ;;  %953 = vmatpush1.bf16.msra.mxu1 %v3149_v33  ;;  %v3246_v14 = vcombine.high %v174_v4, %v182_v5  ;;  %v151_v33 = vld [vmem:[#allocation5 + $0x2e0] sm:$0xff] }
  0x62   :  { %954 = vmatprep.subr.bf16.mxu1 %v3166_v34  ;;  %v3200_v34 = vcombine.high %v127_v24, %v135_v25  ;;  %v3215_v47 = vcombine.low %v143_v32, %v151_v33 }
  0x64   :  { %914 = vmatpush1.bf16.msra.mxu0 %v3163_v19  ;;  %v3245_v19 = vcombine.low %v174_v4, %v182_v5 }
  0x65   :  { %915 = vmatprep.subr.bf16.mxu0 %v3180_v22  ;;  %955 = vmatpush1.bf16.msra.mxu1 %v3165_v41  ;;  %v3138_v22 = vcombine.high %v64_v12, %v72_v13  ;;  %v167_v41 = vld [vmem:[#allocation5 + $0x360] sm:$0xff] }
  0x66   :  { %956 = vmatprep.subr.bf16.mxu1 %v3182_v42  ;;  %v3216_v42 = vcombine.high %v143_v32, %v151_v33  ;;  %v3231_v55 = vcombine.low %v159_v40, %v167_v41 }
  0x68   :  { %916 = vmatpush1.bf16.msra.mxu0 %v3179_v27  ;;  %v3137_v27 = vcombine.low %v64_v12, %v72_v13 }
  0x69   :  { %917 = vmatprep.subr.bf16.mxu0 %v3196_v30  ;;  %957 = vmatpush1.bf16.msra.mxu1 %v3181_v49  ;;  %v3154_v30 = vcombine.high %v80_v20, %v88_v21  ;;  %v183_v49 = vld [vmem:[#allocation5 + $0x3e0] sm:$0xff] }
  0x6a   :  { %958 = vmatprep.subr.bf16.mxu1 %v3198_v50  ;;  %v3232_v50 = vcombine.high %v159_v40, %v167_v41  ;;  %v3247_v63 = vcombine.low %v175_v48, %v183_v49 }
  0x6c   :  { %918 = vmatpush1.bf16.msra.mxu0 %v3195_v35  ;;  %v3153_v35 = vcombine.low %v80_v20, %v88_v21 }
  0x6d   :  { %919 = vmatprep.subr.bf16.mxu0 %v3212_v38  ;;  %959 = vmatpush1.bf16.msra.mxu1 %v3197_v57  ;;  %v3170_v38 = vcombine.high %v96_v28, %v104_v29  ;;  %v73_v57 = vld [vmem:[#allocation5 + $0x70] sm:$0xff] }
  0x6e   :  { %960 = vmatprep.subr.bf16.mxu1 %v3214_v58  ;;  %v3248_v58 = vcombine.high %v175_v48, %v183_v49  ;;  %v3140_v4 = vcombine.high %v65_v56, %v73_v57  ;;  %v3139_v9 = vcombine.low %v65_v56, %v73_v57  ;;  %v177_v49 = vld [vmem:[#allocation5 + $0x3b0] sm:$0xff] }
  0x70   :  { %920 = vmatpush1.bf16.msra.mxu0 %v3211_v43  ;;  %v3169_v43 = vcombine.low %v96_v28, %v104_v29 }
  0x71   :  { %921 = vmatprep.subr.bf16.mxu0 %v3228_v46  ;;  %961 = vmatpush1.bf16.msra.mxu1 %v3213_v3  ;;  %v3186_v46 = vcombine.high %v112_v36, %v120_v37  ;;  %v89_v3 = vld [vmem:[#allocation5 + $0xf0] sm:$0xff] }
  0x72   :  { %962 = vmatprep.subr.bf16.mxu1 %v3230_v6  ;;  %v176_v6 = vld [vmem:[#allocation5 + $0x3a8] sm:$0xff] }
  0x74   :  { %922 = vmatpush1.bf16.msra.mxu0 %v3227_v52  ;;  %v144_v52 = vld [vmem:[#allocation5 + $0x2a8] sm:$0xff] }
  0x75   :  { %923 = vmatprep.subr.bf16.mxu0 %v3244_v54  ;;  %963 = vmatpush1.bf16.msra.mxu1 %v3229_v11  ;;  %v3202_v54 = vcombine.high %v128_v44, %v136_v45  ;;  %v3218_v62 = vcombine.high %v144_v52, %v152_v53  ;;  %v3217_v5 = vcombine.low %v144_v52, %v152_v53  ;;  %v105_v11 = vld [vmem:[#allocation5 + $0x170] sm:$0xff] }
  0x76   :  { %964 = vmatprep.subr.bf16.mxu1 %v3246_v14  ;;  %v66_v14 = vld [vmem:[#allocation5 + $0x38] sm:$0xff]  ;;  %v185_v52 = vld [vmem:[#allocation5 + $0x3f0] sm:$0xff] }
  0x77   :  { %v3252_v56 = vcombine.high %v177_v49, %v185_v52 }
  0x78   :  { %924 = vmatpush1.bf16.msra.mxu0 %v3243_v60  ;;  %v160_v60 = vld [vmem:[#allocation5 + $0x328] sm:$0xff] }
  0x79   :  { %991 = vmatprep.subr.bf16.mxu0 %v3136_v1  ;;  %965 = vmatpush1.bf16.msra.mxu1 %v3245_v19  ;;  %v81_v1 = vld [vmem:[#allocation5 + $0xb0] sm:$0xff]  ;;  %v3234_v8 = vcombine.high %v160_v60, %v168_v61  ;;  %v3233_v13 = vcombine.low %v160_v60, %v168_v61  ;;  %v170_v60 = vld [vmem:[#allocation5 + $0x378] sm:$0xff]  ;;  %v3601_v61 = vld [vmem:[#allocation7 + $0x404] ss:$8 sps:$4 sm:$0xff]  }
  0x7a   :  { %1032 = vmatprep.subr.bf16.mxu1 %v3138_v22  ;;  %v3156_v12 = vcombine.high %v81_v1, %v89_v3  ;;  %v3155_v17 = vcombine.low %v81_v1, %v89_v3  ;;  %v121_v19 = vld [vmem:[#allocation5 + $0x1f0] sm:$0xff]  ;;  %v82_v22 = vld [vmem:[#allocation5 + $0xb8] sm:$0xff] }
  0x7b   :  { %942 = vmatmul.mubr.bf16.vlgmr.msra.gmra.mrb[4].mxu0 %v4099_v2  ;;  %v178_v1 = vld [vmem:[#allocation5 + $0x3b8] sm:$0xff] }
  0x7c   :  { %992 = vmatpush1.bf16.msra.mxu0 %v3135_v7  ;;  %1023 = vmatprep.mubr.bf16.mxu0 %v4034_v0  ;;  %v184_v7 = vld [vmem:[#allocation5 + $0x3e8] sm:$0xff]  ;;  %v186_v3 = vld [vmem:[#allocation5 + $0x3f8] sm:$0xff] }
  0x7d   :  { %993 = vmatprep.subr.bf16.mxu0 %v3152_v10  ;;  %983 = vmatmul.mubr.bf16.vlgmr.msra.gmra.mrb[4].mxu1 %v4099_v2  ;;  %v97_v10 = vld [vmem:[#allocation5 + $0x130] sm:$0xff]  ;;  %v3250_v16 = vcombine.high %v176_v6, %v184_v7  ;;  %v3249_v21 = vcombine.low %v176_v6, %v184_v7 }
  0x7e   :  { %1033 = vmatpush1.bf16.msra.mxu1 %v3137_v27  ;;  %1064 = vmatprep.mubr.bf16.mxu1 %v4034_v0  ;;  %v3172_v20 = vcombine.high %v97_v10, %v105_v11  ;;  %v3171_v25 = vcombine.low %v97_v10, %v105_v11  ;;  %v137_v27 = vld [vmem:[#allocation5 + $0x270] sm:$0xff]  ;;  %v3613_v11 = vld [vmem:[#allocation7 + $0x424] ss:$8 sps:$4 sm:$0xff]  }
  0x7f   :  { %1034 = vmatprep.subr.bf16.mxu1 %v3154_v30  ;;  %v98_v30 = vld [vmem:[#allocation5 + $0x138] sm:$0xff] }
  0x80   :  { %994 = vmatpush1.bf16.msra.mxu0 %v3151_v15  ;;  %v74_v15 = vld [vmem:[#allocation5 + $0x78] sm:$0xff] }
  0x81   :  { %995 = vmatprep.subr.bf16.mxu0 %v3168_v18  ;;  %v113_v18 = vld [vmem:[#allocation5 + $0x1b0] sm:$0xff]  ;;  %v3142_v24 = vcombine.high %v66_v14, %v74_v15  ;;  %v3141_v29 = vcombine.low %v66_v14, %v74_v15  ;;  %v3611_v14 = vld [vmem:[#allocation7 + $0x420] ss:$8 sps:$4 sm:$0xff]  }
  0x82   :  { %1035 = vmatpush1.bf16.msra.mxu1 %v3153_v35  ;;  %v3188_v28 = vcombine.high %v113_v18, %v121_v19  ;;  %v3187_v33 = vcombine.low %v113_v18, %v121_v19  ;;  %v153_v35 = vld [vmem:[#allocation5 + $0x2f0] sm:$0xff]  ;;  %v3625_v19 = vld [vmem:[#allocation7 + $0x444] ss:$8 sps:$4 sm:$0xff]  }
  0x83   :  { %1036 = vmatprep.subr.bf16.mxu1 %v3170_v38  ;;  %v114_v38 = vld [vmem:[#allocation5 + $0x1b8] sm:$0xff] }
  0x84   :  { %996 = vmatpush1.bf16.msra.mxu0 %v3167_v23  ;;  %v90_v23 = vld [vmem:[#allocation5 + $0xf8] sm:$0xff] }
  0x85   :  { %997 = vmatprep.subr.bf16.mxu0 %v3184_v26  ;;  %v129_v26 = vld [vmem:[#allocation5 + $0x230] sm:$0xff]  ;;  %v3158_v32 = vcombine.high %v82_v22, %v90_v23  ;;  %v3157_v37 = vcombine.low %v82_v22, %v90_v23  ;;  %v3623_v22 = vld [vmem:[#allocation7 + $0x440] ss:$8 sps:$4 sm:$0xff]  }
  0x86   :  { %1037 = vmatpush1.bf16.msra.mxu1 %v3169_v43  ;;  %v3204_v36 = vcombine.high %v129_v26, %v137_v27  ;;  %v3203_v41 = vcombine.low %v129_v26, %v137_v27  ;;  %v169_v43 = vld [vmem:[#allocation5 + $0x370] sm:$0xff]  ;;  %v3637_v27 = vld [vmem:[#allocation7 + $0x464] ss:$8 sps:$4 sm:$0xff]  }
  0x87   :  { %1038 = vmatprep.subr.bf16.mxu1 %v3186_v46  ;;  %v130_v46 = vld [vmem:[#allocation5 + $0x238] sm:$0xff] }
  0x88   :  { %998 = vmatpush1.bf16.msra.mxu0 %v3183_v31  ;;  %v106_v31 = vld [vmem:[#allocation5 + $0x178] sm:$0xff] }
  0x89   :  { %999 = vmatprep.subr.bf16.mxu0 %v3200_v34  ;;  %v145_v34 = vld [vmem:[#allocation5 + $0x2b0] sm:$0xff]  ;;  %v3174_v40 = vcombine.high %v98_v30, %v106_v31  ;;  %v3173_v45 = vcombine.low %v98_v30, %v106_v31  ;;  %v3635_v30 = vld [vmem:[#allocation7 + $0x460] ss:$8 sps:$4 sm:$0xff]  }
  0x8a   :  { %1039 = vmatpush1.bf16.msra.mxu1 %v3185_v51  ;;  %v3220_v44 = vcombine.high %v145_v34, %v153_v35  ;;  %v3219_v48 = vcombine.low %v145_v34, %v153_v35  ;;  %v146_v51 = vld [vmem:[#allocation5 + $0x2b8] sm:$0xff]  ;;  %v3649_v35 = vld [vmem:[#allocation7 + $0x484] ss:$8 sps:$4 sm:$0xff]  }
  0x8b   :  { %1040 = vmatprep.subr.bf16.mxu1 %v3202_v54  ;;  %v154_v54 = vld [vmem:[#allocation5 + $0x2f8] sm:$0xff] }
  0x8c   :  { %1000 = vmatpush1.bf16.msra.mxu0 %v3199_v39  ;;  %v122_v39 = vld [vmem:[#allocation5 + $0x1f8] sm:$0xff] }
  0x8d   :  { %1001 = vmatprep.subr.bf16.mxu0 %v3216_v42  ;;  %v161_v42 = vld [vmem:[#allocation5 + $0x330] sm:$0xff] }
  0x8e   :  { %1041 = vmatpush1.bf16.msra.mxu1 %v3201_v59  ;;  %v3222_v59 = vcombine.high %v146_v51, %v154_v54  ;;  %v3607_v6 = vld [vmem:[#allocation7 + $0x414] ss:$8 sps:$4 sm:$0xff]   ;;  %v3605_v10 = vld [vmem:[#allocation7 + $0x410] ss:$8 sps:$4 sm:$0xff]  }
  0x8f   :  { %1042 = vmatprep.subr.bf16.mxu1 %v3218_v62  ;;  %v3251_v62 = vcombine.low %v177_v49, %v185_v52  ;;  %v3619_v15 = vld [vmem:[#allocation7 + $0x434] ss:$8 sps:$4 sm:$0xff]   ;;  %v3617_v18 = vld [vmem:[#allocation7 + $0x430] ss:$8 sps:$4 sm:$0xff]   ;;  %v3671_v52 = vld [vmem:[#allocation7 + $0x4c0] ss:$8 sps:$4 sm:$0xff]  }
  0x90   :  { %1002 = vmatpush1.bf16.msra.mxu0 %v3215_v47  ;;  %v3190_v47 = vcombine.high %v114_v38, %v122_v39  ;;  %v3631_v23 = vld [vmem:[#allocation7 + $0x454] ss:$8 sps:$4 sm:$0xff]   ;;  %v3629_v26 = vld [vmem:[#allocation7 + $0x450] ss:$8 sps:$4 sm:$0xff]  }
  0x91   :  { %1003 = vmatprep.subr.bf16.mxu0 %v3232_v50  ;;  %v3236_v50 = vcombine.high %v161_v42, %v169_v43  ;;  %v3643_v31 = vld [vmem:[#allocation7 + $0x474] ss:$8 sps:$4 sm:$0xff]   ;;  %v3641_v34 = vld [vmem:[#allocation7 + $0x470] ss:$8 sps:$4 sm:$0xff]  }
  0x92   :  { %1043 = vmatpush1.bf16.msra.mxu1 %v3217_v5  ;;  %v3599_v5 = vld [vmem:[#allocation7 + $0x400] ss:$8 sps:$4 sm:$0xff]   ;;  %v3665_v49 = vld [vmem:[#allocation7 + $0x4b0] ss:$8 sps:$4 sm:$0xff]  }
  0x93   :  { %1044 = vmatprep.subr.bf16.mxu1 %v3234_v8  ;;  %v3254_v8 = vcombine.high %v178_v1, %v186_v3 }
  0x94   :  { %1004 = vmatpush1.bf16.msra.mxu0 %v3231_v55  ;;  %v3235_v55 = vcombine.low %v161_v42, %v169_v43  ;;  %v3653_v42 = vld [vmem:[#allocation7 + $0x490] ss:$8 sps:$4 sm:$0xff]   ;;  %v3661_v43 = vld [vmem:[#allocation7 + $0x4a4] ss:$8 sps:$4 sm:$0xff]  }
  0x95   :  { %1005 = vmatprep.subr.bf16.mxu0 %v3248_v58  ;;  %v162_v58 = vld [vmem:[#allocation5 + $0x338] sm:$0xff] }
  0x96   :  { %1045 = vmatpush1.bf16.msra.mxu1 %v3233_v13  ;;  %v3237_v7 = vcombine.low %v162_v58, %v170_v60  ;;  %v3550_v13 = vld [vmem:[#allocation7 + $0x4] ss:$8 sps:$4 sm:$0xff]  }
  0x97   :  { %1046 = vmatprep.subr.bf16.mxu1 %v3250_v16  ;;  %v3548_v16 = vld [vmem:[#allocation7] ss:$8 sps:$4 sm:$0xff]  }
  0x98   :  { %1006 = vmatpush1.bf16.msra.mxu0 %v3247_v63  ;;  %v3221_v63 = vcombine.low %v146_v51, %v154_v54  ;;  %v3580_v51 = vld [vmem:[#allocation7 + $0xa4] ss:$8 sps:$4 sm:$0xff]   ;;  %v3578_v54 = vld [vmem:[#allocation7 + $0xa0] ss:$8 sps:$4 sm:$0xff]  }
  0x99   :  { %1073 = vmatprep.subr.bf16.mxu0 %v3140_v4  ;;  %v3238_v4 = vcombine.high %v162_v58, %v170_v60  ;;  %v3581_v58 = vld [vmem:[#allocation7 + $0xb0] ss:$8 sps:$4 sm:$0xff]   ;;  %v3683_v60 = vld [vmem:[#allocation7 + $0x4e0] ss:$8 sps:$4 sm:$0xff]  }
  0x9a   :  { %1047 = vmatpush1.bf16.msra.mxu1 %v3249_v21  ;;  %v3556_v21 = vld [vmem:[#allocation7 + $0x24] ss:$8 sps:$4 sm:$0xff]  }
  0x9b   :  { %1024 = vmatmul.mubr.bf16.vlgmr.msra.gmra.mrb[8].mxu0 %v4099_v2  ;;  %1114 = vmatprep.subr.bf16.mxu1 %v3142_v24  ;;  %v3554_v24 = vld [vmem:[#allocation7 + $0x20] ss:$8 sps:$4 sm:$0xff]  }
  0x9c   :  { %1074 = vmatpush1.bf16.msra.mxu0 %v3139_v9  ;;  %1105 = vmatprep.mubr.bf16.mxu0 %v4034_v0  ;;  %v3932_v9 = vld [vmem:[#allocation2] sm:$0xf] }
  0x9d   :  { %1075 = vmatprep.subr.bf16.mxu0 %v3156_v12  ;;  %1065 = vmatmul.mubr.bf16.vlgmr.msra.gmra.mrb[8].mxu1 %v4099_v2  ;;  %v138_v2 = vld [vmem:[#allocation5 + $0x278] sm:$0xff]  ;;  %v3253_v12 = vcombine.low %v178_v1, %v186_v3  ;;  %v3697_v3 = vld [vmem:[#allocation7 + $0x504] ss:$8 sps:$4 sm:$0xff]  }
  0x9e   :  { %1115 = vmatpush1.bf16.msra.mxu1 %v3141_v29  ;;  %1146 = vmatprep.mubr.bf16.mxu1 %v4034_v0  ;;  %v3189_v0 = vcombine.low %v114_v38, %v122_v39  ;;  %v3206_v53 = vcombine.high %v130_v46, %v138_v2  ;;  %v3205_v57 = vcombine.low %v130_v46, %v138_v2  ;;  %v3562_v29 = vld [vmem:[#allocation7 + $0x44] ss:$8 sps:$4 sm:$0xff]   ;;  %v3647_v38 = vld [vmem:[#allocation7 + $0x480] ss:$8 sps:$4 sm:$0xff]   ;;  %v3655_v39 = vld [vmem:[#allocation7 + $0x494] ss:$8 sps:$4 sm:$0xff]  }
  0x9f   :  { %1116 = vmatprep.subr.bf16.mxu1 %v3158_v32  ;;  %v3560_v32 = vld [vmem:[#allocation7 + $0x40] ss:$8 sps:$4 sm:$0xff]   ;;  %v3667_v2 = vld [vmem:[#allocation7 + $0x4b4] ss:$8 sps:$4 sm:$0xff]   ;;  %v3689_v1 = vld [vmem:[#allocation7 + $0x4f0] ss:$8 sps:$4 sm:$0xff]  }
  0xa0   :  { %1076 = vmatpush1.bf16.msra.mxu0 %v3155_v17  ;;  %v3553_v17 = vld [vmem:[#allocation7 + $0x14] ss:$8 sps:$4 sm:$0xff]   ;;  %v3659_v46 = vld [vmem:[#allocation7 + $0x4a0] ss:$8 sps:$4 sm:$0xff]  }
  0xa1   :  { %1077 = vmatprep.subr.bf16.mxu0 %v3172_v20  ;;  %v3551_v20 = vld [vmem:[#allocation7 + $0x10] ss:$8 sps:$4 sm:$0xff]  }
  0xa2   :  { %1117 = vmatpush1.bf16.msra.mxu1 %v3157_v37  ;;  %v3568_v37 = vld [vmem:[#allocation7 + $0x64] ss:$8 sps:$4 sm:$0xff]  }
  0xa3   :  { %1118 = vmatprep.subr.bf16.mxu1 %v3174_v40  ;;  %v3566_v40 = vld [vmem:[#allocation7 + $0x60] ss:$8 sps:$4 sm:$0xff]  }
  0xa4   :  { %1078 = vmatpush1.bf16.msra.mxu0 %v3171_v25  ;;  %v3559_v25 = vld [vmem:[#allocation7 + $0x34] ss:$8 sps:$4 sm:$0xff]  }
  0xa5   :  { %1079 = vmatprep.subr.bf16.mxu0 %v3188_v28  ;;  %v3557_v28 = vld [vmem:[#allocation7 + $0x30] ss:$8 sps:$4 sm:$0xff]  }
  0xa6   :  { %1119 = vmatpush1.bf16.msra.mxu1 %v3173_v45  ;;  %v3574_v45 = vld [vmem:[#allocation7 + $0x84] ss:$8 sps:$4 sm:$0xff]  }
  0xa7   :  { %1120 = vmatprep.subr.bf16.mxu1 %v3190_v47  ;;  %v3572_v47 = vld [vmem:[#allocation7 + $0x80] ss:$8 sps:$4 sm:$0xff]  }
  0xa8   :  { %1080 = vmatpush1.bf16.msra.mxu0 %v3187_v33  ;;  %v3565_v33 = vld [vmem:[#allocation7 + $0x54] ss:$8 sps:$4 sm:$0xff]  }
  0xa9   :  { %1081 = vmatprep.subr.bf16.mxu0 %v3204_v36  ;;  %v3563_v36 = vld [vmem:[#allocation7 + $0x50] ss:$8 sps:$4 sm:$0xff]  }
  0xaa   :  { %1121 = vmatpush1.bf16.msra.mxu1 %v3189_v0  ;;  %v3575_v0 = vld [vmem:[#allocation7 + $0x90] ss:$8 sps:$4 sm:$0xff]  }
  0xab   :  { %1122 = vmatprep.subr.bf16.mxu1 %v3206_v53  ;;  %v3679_v53 = vld [vmem:[#allocation7 + $0x4d4] ss:$8 sps:$4 sm:$0xff]  }
  0xac   :  { %1082 = vmatpush1.bf16.msra.mxu0 %v3203_v41  ;;  %v3571_v41 = vld [vmem:[#allocation7 + $0x74] ss:$8 sps:$4 sm:$0xff]  }
  0xad   :  { %1083 = vmatprep.subr.bf16.mxu0 %v3220_v44  ;;  %v3569_v44 = vld [vmem:[#allocation7 + $0x70] ss:$8 sps:$4 sm:$0xff]  }
  0xae   :  { %1123 = vmatpush1.bf16.msra.mxu1 %v3205_v57  ;;  %v3685_v57 = vld [vmem:[#allocation7 + $0x4e4] ss:$8 sps:$4 sm:$0xff]  }
  0xaf   :  { %1124 = vmatprep.subr.bf16.mxu1 %v3222_v59  ;;  %v3586_v59 = vld [vmem:[#allocation7 + $0xc4] ss:$8 sps:$4 sm:$0xff]  }
  0xb0   :  { %1084 = vmatpush1.bf16.msra.mxu0 %v3219_v48  ;;  %v3577_v48 = vld [vmem:[#allocation7 + $0x94] ss:$8 sps:$4 sm:$0xff]  }
  0xb1   :  { %1085 = vmatprep.subr.bf16.mxu0 %v3236_v50  ;;  %v3673_v50 = vld [vmem:[#allocation7 + $0x4c4] ss:$8 sps:$4 sm:$0xff]  }
  0xb2   :  { %1125 = vmatpush1.bf16.msra.mxu1 %v3221_v63  ;;  %v3589_v63 = vld [vmem:[#allocation7 + $0xd4] ss:$8 sps:$4 sm:$0xff]  }
  0xb3   :  { %1126 = vmatprep.subr.bf16.mxu1 %v3238_v4  ;;  %v3587_v4 = vld [vmem:[#allocation7 + $0xd0] ss:$8 sps:$4 sm:$0xff]  }
  0xb4   :  { %1086 = vmatpush1.bf16.msra.mxu0 %v3235_v55  ;;  %v3583_v55 = vld [vmem:[#allocation7 + $0xb4] ss:$8 sps:$4 sm:$0xff]  }
  0xb5   :  { %1087 = vmatprep.subr.bf16.mxu0 %v3252_v56  ;;  %v3677_v56 = vld [vmem:[#allocation7 + $0x4d0] ss:$8 sps:$4 sm:$0xff]  }
  0xb6   :  { %1127 = vmatpush1.bf16.msra.mxu1 %v3237_v7  ;;  %v3595_v7 = vld [vmem:[#allocation7 + $0xf4] ss:$8 sps:$4 sm:$0xff]  }
  0xb7   :  { %1128 = vmatprep.subr.bf16.mxu1 %v3254_v8  ;;  %v3593_v8 = vld [vmem:[#allocation7 + $0xf0] ss:$8 sps:$4 sm:$0xff]  }
  0xb8   :  { %1088 = vmatpush1.bf16.msra.mxu0 %v3251_v62  ;;  %v3584_v62 = vld [vmem:[#allocation7 + $0xc0] ss:$8 sps:$4 sm:$0xff]  }
  0xb9   :  { %2899 = vmatprep.subr.bf16.mxu0 %v3601_v61  ;;  %v3691_v61 = vld [vmem:[#allocation7 + $0x4f4] ss:$8 sps:$4 sm:$0xff]  }
  0xba   :  { %1129 = vmatpush1.bf16.msra.mxu1 %v3253_v12 }
  0xbb   :  { %1106 = vmatmul.mubr.bf16.vlgmr.msra.gmra.mrb[12].mxu0 %v3932_v9  ;;  %2735 = vmatprep.subr.bf16.mxu1 %v3550_v13 }
  0xbc   :  { %2900 = vmatpush1.bf16.msra.mxu0 %v3599_v5  ;;  %v3592_v5 = vld [vmem:[#allocation7 + $0xe4] ss:$8 sps:$4 sm:$0xff]  }
  0xbd   :  { %2901 = vmatprep.subr.bf16.mxu0 %v3607_v6  ;;  %1147 = vmatmul.mubr.bf16.vlgmr.msra.gmra.mrb[12].mxu1 %v3932_v9  ;;  %v3590_v6 = vld [vmem:[#allocation7 + $0xe0] ss:$8 sps:$4 sm:$0xff]   ;;  %v3598_v9 = vld [vmem:[#allocation7 + $0x104] ss:$8 sps:$4 sm:$0xff]  }
  0xbe   :  { %2736 = vmatpush1.bf16.msra.mxu1 %v3548_v16 }
  0xbf   :  { %2737 = vmatprep.subr.bf16.mxu1 %v3553_v17 }
  0xc0   :  { %2902 = vmatpush1.bf16.msra.mxu0 %v3605_v10 }
  0xc1   :  { %2903 = vmatprep.subr.bf16.mxu0 %v3613_v11 }
  0xc2   :  { %2738 = vmatpush1.bf16.msra.mxu1 %v3551_v20  ;;  %v3602_v20 = vld [vmem:[#allocation7 + $0x110] ss:$8 sps:$4 sm:$0xff]  }
  0xc3   :  { %2739 = vmatprep.subr.bf16.mxu1 %v3556_v21  ;;  %v3610_v21 = vld [vmem:[#allocation7 + $0x124] ss:$8 sps:$4 sm:$0xff]  }
  0xc4   :  { %2904 = vmatpush1.bf16.msra.mxu0 %v3611_v14 }
  0xc5   :  { %2905 = vmatprep.subr.bf16.mxu0 %v3619_v15 }
  0xc6   :  { %2740 = vmatpush1.bf16.msra.mxu1 %v3554_v24  ;;  %v3608_v24 = vld [vmem:[#allocation7 + $0x120] ss:$8 sps:$4 sm:$0xff]  }
  0xc7   :  { %2741 = vmatprep.subr.bf16.mxu1 %v3559_v25 }
  0xc8   :  { %2906 = vmatpush1.bf16.msra.mxu0 %v3617_v18  ;;  %v3596_v18 = vld [vmem:[#allocation7 + $0x100] ss:$8 sps:$4 sm:$0xff]  }
  0xc9   :  { %2907 = vmatprep.subr.bf16.mxu0 %v3625_v19  ;;  %v3604_v19 = vld [vmem:[#allocation7 + $0x114] ss:$8 sps:$4 sm:$0xff]  }
  0xca   :  { %2742 = vmatpush1.bf16.msra.mxu1 %v3557_v28 }
  0xcb   :  { %2743 = vmatprep.subr.bf16.mxu1 %v3562_v29 }
  0xcc   :  { %2908 = vmatpush1.bf16.msra.mxu0 %v3623_v22 }
  0xcd   :  { %2909 = vmatprep.subr.bf16.mxu0 %v3631_v23 }
  0xce   :  { %2744 = vmatpush1.bf16.msra.mxu1 %v3560_v32  ;;  %v3620_v32 = vld [vmem:[#allocation7 + $0x140] ss:$8 sps:$4 sm:$0xff]  }
  0xcf   :  { %2745 = vmatprep.subr.bf16.mxu1 %v3565_v33  ;;  %v3628_v33 = vld [vmem:[#allocation7 + $0x154] ss:$8 sps:$4 sm:$0xff]  }
  0xd0   :  { %2910 = vmatpush1.bf16.msra.mxu0 %v3629_v26 }
  0xd1   :  { %2911 = vmatprep.subr.bf16.mxu0 %v3637_v27  ;;  %v3616_v27 = vld [vmem:[#allocation7 + $0x134] ss:$8 sps:$4 sm:$0xff]  }
  0xd2   :  { %2746 = vmatpush1.bf16.msra.mxu1 %v3563_v36  ;;  %v3632_v36 = vld [vmem:[#allocation7 + $0x160] ss:$8 sps:$4 sm:$0xff]  }
  0xd3   :  { %2747 = vmatprep.subr.bf16.mxu1 %v3568_v37  ;;  %v3640_v37 = vld [vmem:[#allocation7 + $0x174] ss:$8 sps:$4 sm:$0xff]  }
  0xd4   :  { %2912 = vmatpush1.bf16.msra.mxu0 %v3635_v30  ;;  %v3614_v30 = vld [vmem:[#allocation7 + $0x130] ss:$8 sps:$4 sm:$0xff]  }
  0xd5   :  { %2913 = vmatprep.subr.bf16.mxu0 %v3643_v31  ;;  %v3622_v31 = vld [vmem:[#allocation7 + $0x144] ss:$8 sps:$4 sm:$0xff]  }
  0xd6   :  { %2748 = vmatpush1.bf16.msra.mxu1 %v3566_v40 }
  0xd7   :  { %2749 = vmatprep.subr.bf16.mxu1 %v3571_v41  ;;  %v3646_v41 = vld [vmem:[#allocation7 + $0x184] ss:$8 sps:$4 sm:$0xff]  }
  0xd8   :  { %2914 = vmatpush1.bf16.msra.mxu0 %v3641_v34  ;;  %v3626_v34 = vld [vmem:[#allocation7 + $0x150] ss:$8 sps:$4 sm:$0xff]  }
  0xd9   :  { %2915 = vmatprep.subr.bf16.mxu0 %v3649_v35  ;;  %v3634_v35 = vld [vmem:[#allocation7 + $0x164] ss:$8 sps:$4 sm:$0xff]  }
  0xda   :  { %2750 = vmatpush1.bf16.msra.mxu1 %v3569_v44  ;;  %v3644_v44 = vld [vmem:[#allocation7 + $0x180] ss:$8 sps:$4 sm:$0xff]  }
  0xdb   :  { %2751 = vmatprep.subr.bf16.mxu1 %v3574_v45  ;;  %v3652_v45 = vld [vmem:[#allocation7 + $0x194] ss:$8 sps:$4 sm:$0xff]  }
  0xdc   :  { %2916 = vmatpush1.bf16.msra.mxu0 %v3647_v38 }
  0xdd   :  { %2917 = vmatprep.subr.bf16.mxu0 %v3655_v39  ;;  %v3638_v39 = vld [vmem:[#allocation7 + $0x170] ss:$8 sps:$4 sm:$0xff]  }
  0xde   :  { %2752 = vmatpush1.bf16.msra.mxu1 %v3572_v47 }
  0xdf   :  { %2753 = vmatprep.subr.bf16.mxu1 %v3577_v48 }
  0xe0   :  { %2918 = vmatpush1.bf16.msra.mxu0 %v3653_v42 }
  0xe1   :  { %2919 = vmatprep.subr.bf16.mxu0 %v3661_v43 }
  0xe2   :  { %2754 = vmatpush1.bf16.msra.mxu1 %v3575_v0  ;;  %v3664_v0 = vld [vmem:[#allocation7 + $0x1b4] ss:$8 sps:$4 sm:$0xff]  }
  0xe3   :  { %2755 = vmatprep.subr.bf16.mxu1 %v3580_v51 }
  0xe4   :  { %2920 = vmatpush1.bf16.msra.mxu0 %v3659_v46  ;;  %v3650_v46 = vld [vmem:[#allocation7 + $0x190] ss:$8 sps:$4 sm:$0xff]  }
  0xe5   :  { %2921 = vmatprep.subr.bf16.mxu0 %v3667_v2  ;;  %v3658_v2 = vld [vmem:[#allocation7 + $0x1a4] ss:$8 sps:$4 sm:$0xff]  }
  0xe6   :  { %2756 = vmatpush1.bf16.msra.mxu1 %v3578_v54  ;;  %v3668_v54 = vld [vmem:[#allocation7 + $0x1c0] ss:$8 sps:$4 sm:$0xff]  }
  0xe7   :  { %2757 = vmatprep.subr.bf16.mxu1 %v3583_v55  ;;  %v3676_v55 = vld [vmem:[#allocation7 + $0x1d4] ss:$8 sps:$4 sm:$0xff]  }
  0xe8   :  { %2922 = vmatpush1.bf16.msra.mxu0 %v3665_v49  ;;  %v3656_v49 = vld [vmem:[#allocation7 + $0x1a0] ss:$8 sps:$4 sm:$0xff]  }
  0xe9   :  { %2923 = vmatprep.subr.bf16.mxu0 %v3673_v50 }
  0xea   :  { %2758 = vmatpush1.bf16.msra.mxu1 %v3581_v58  ;;  %v3680_v58 = vld [vmem:[#allocation7 + $0x1e0] ss:$8 sps:$4 sm:$0xff]  }
  0xeb   :  { %2759 = vmatprep.subr.bf16.mxu1 %v3586_v59  ;;  %v3688_v59 = vld [vmem:[#allocation7 + $0x1f4] ss:$8 sps:$4 sm:$0xff]  }
  0xec   :  { %2924 = vmatpush1.bf16.msra.mxu0 %v3671_v52  ;;  %v3662_v52 = vld [vmem:[#allocation7 + $0x1b0] ss:$8 sps:$4 sm:$0xff]  }
  0xed   :  { %2925 = vmatprep.subr.bf16.mxu0 %v3679_v53  ;;  %v3670_v53 = vld [vmem:[#allocation7 + $0x1c4] ss:$8 sps:$4 sm:$0xff]  }
  0xee   :  { %2760 = vmatpush1.bf16.msra.mxu1 %v3584_v62  ;;  %v3686_v62 = vld [vmem:[#allocation7 + $0x1f0] ss:$8 sps:$4 sm:$0xff]  }
  0xef   :  { %2761 = vmatprep.subr.bf16.mxu1 %v3589_v63 }
  0xf0   :  { %2926 = vmatpush1.bf16.msra.mxu0 %v3677_v56  ;;  %v3674_v56 = vld [vmem:[#allocation7 + $0x1d0] ss:$8 sps:$4 sm:$0xff]  }
  0xf1   :  { %2927 = vmatprep.subr.bf16.mxu0 %v3685_v57  ;;  %v3682_v57 = vld [vmem:[#allocation7 + $0x1e4] ss:$8 sps:$4 sm:$0xff]  }
  0xf2   :  { %2762 = vmatpush1.bf16.msra.mxu1 %v3587_v4 }
  0xf3   :  { %2763 = vmatprep.subr.bf16.mxu1 %v3592_v5 }
  0xf4   :  { %2928 = vmatpush1.bf16.msra.mxu0 %v3683_v60 }
  0xf5   :  { %2929 = vmatprep.subr.bf16.mxu0 %v3691_v61 }
  0xf6   :  { %2764 = vmatpush1.bf16.msra.mxu1 %v3590_v6 }
  0xf7   :  { %2765 = vmatprep.subr.bf16.mxu1 %v3595_v7 }
  0xf8   :  { %2930 = vmatpush1.bf16.msra.mxu0 %v3689_v1 }
  0xf9   :  { %2940 = vmatprep.subr.bf16.mxu0 %v3697_v3  ;;  %v3694_v3 = vld [vmem:[#allocation7 + $0x204] ss:$8 sps:$4 sm:$0xff]  }
  0xfa   :  { %2766 = vmatpush1.bf16.msra.mxu1 %v3593_v8 }
  0xfb   :  { %2776 = vmatprep.subr.bf16.mxu1 %v3598_v9 }
 0x12e   :  { %v861_v10 = vpop.f32.mrb[0].mxu0  ;;  %v4113_v22 = vpop.f32.mrb[0].mxu1 }
 0x12f   :  { %v1155_v11 = vmax.f32 %v861_v10, 0.0  ;;  %v863_v12 = vpop.f32.mrb[1].mxu0  ;;  %v904_v23 = vpop.f32.mrb[1].mxu1  ;;  %v1157_v60 = vmax.f32 %v4113_v22, 0.0  ;;  %v3692_v10 = vld [vmem:[#allocation7 + $0x200] ss:$8 sps:$4 sm:$0xff]  }
 0x130   :  { %v1156_v13 = vmax.f32 %v863_v12, 0.0  ;;  %v865_v14 = vpop.f32.mrb[2].mxu0  ;;  %v1158_v25 = vmax.f32 %v904_v23, 0.0  ;;  %v906_v26 = vpop.f32.mrb[2].mxu1  ;;  %v3695_v12 = vld [vmem:[#allocation7 + $0x500] ss:$8 sps:$4 sm:$0xff]  }
 0x131   :  { %v1171_v15 = vpack.c.bf16 %v1155_v11, %v1155_v11  ;;  %v866_v16 = vpop.f32.mrb[3].mxu0  ;;  %v907_v28 = vpop.f32.mrb[3].mxu1  ;;  %v1173_v7 = vpack.c.bf16 %v1157_v60, %v1157_v60  ;;  %v3704_v22 = vld [vmem:[#allocation7 + $0x220] ss:$8 sps:$4 sm:$0xff]   ;;  %v3712_v26 = vld [vmem:[#allocation7 + $0x234] ss:$8 sps:$4 sm:$0xff]  }
 0x132   :  { %v1172_v17 = vpack.c.bf16 %v1156_v13, %v1156_v13  ;;  %v1174_v29 = vpack.c.bf16 %v1158_v25, %v1158_v25  ;;  %v3700_v13 = vld [vmem:[#allocation7 + $0x214] ss:$8 sps:$4 sm:$0xff]   ;;  %v3698_v16 = vld [vmem:[#allocation7 + $0x210] ss:$8 sps:$4 sm:$0xff]   ;;  %v3707_v25 = vld [vmem:[#allocation7 + $0x520] ss:$8 sps:$4 sm:$0xff]  }
 0x133   :  { %v3715_v28 = vld [vmem:[#allocation7 + $0x534] ss:$8 sps:$4 sm:$0xff]   ;;  %v3749_v60 = vld [vmem:[#allocation7 + $0x590] ss:$8 sps:$4 sm:$0xff]  }
 0x134   :  { %2767 = vmatprep.mubr.bf16.mxu1 %v1172_v17  ;;  %v3701_v17 = vld [vmem:[#allocation7 + $0x510] ss:$8 sps:$4 sm:$0xff]  }
 0x135   :  { %2768 = vmatmul.mubr.bf16.vlgmr.msra.gmra.mrb[16].mxu1 %v1171_v15  ;;  %v3703_v15 = vld [vmem:[#allocation7 + $0x514] ss:$8 sps:$4 sm:$0xff]  }
 0x136   :  { %2777 = vmatpush1.bf16.msra.mxu1 %v3596_v18  ;;  %2808 = vmatprep.mubr.bf16.mxu1 %v1174_v29  ;;  %v3706_v18 = vld [vmem:[#allocation7 + $0x224] ss:$8 sps:$4 sm:$0xff]  }
 0x137   :  { %2778 = vmatprep.subr.bf16.mxu1 %v3604_v19  ;;  %v3709_v19 = vld [vmem:[#allocation7 + $0x524] ss:$8 sps:$4 sm:$0xff]  }
 0x13a   :  { %2779 = vmatpush1.bf16.msra.mxu1 %v3602_v20 }
 0x13b   :  { %2780 = vmatprep.subr.bf16.mxu1 %v3610_v21 }
 0x13e   :  { %2781 = vmatpush1.bf16.msra.mxu1 %v3608_v24 }
 0x13f   :  { %2782 = vmatprep.subr.bf16.mxu1 %v3616_v27 }
 0x142   :  { %2783 = vmatpush1.bf16.msra.mxu1 %v3614_v30  ;;  %v3710_v30 = vld [vmem:[#allocation7 + $0x230] ss:$8 sps:$4 sm:$0xff]  }
 0x143   :  { %2784 = vmatprep.subr.bf16.mxu1 %v3622_v31  ;;  %v3713_v31 = vld [vmem:[#allocation7 + $0x530] ss:$8 sps:$4 sm:$0xff]  }
 0x146   :  { %2785 = vmatpush1.bf16.msra.mxu1 %v3620_v32  ;;  %v3718_v32 = vld [vmem:[#allocation7 + $0x244] ss:$8 sps:$4 sm:$0xff]  }
 0x147   :  { %2786 = vmatprep.subr.bf16.mxu1 %v3628_v33  ;;  %v3721_v33 = vld [vmem:[#allocation7 + $0x544] ss:$8 sps:$4 sm:$0xff]  }
 0x14a   :  { %2787 = vmatpush1.bf16.msra.mxu1 %v3626_v34  ;;  %v3716_v34 = vld [vmem:[#allocation7 + $0x240] ss:$8 sps:$4 sm:$0xff]  }
 0x14b   :  { %2788 = vmatprep.subr.bf16.mxu1 %v3634_v35  ;;  %v3719_v35 = vld [vmem:[#allocation7 + $0x540] ss:$8 sps:$4 sm:$0xff]  }
 0x14e   :  { %2789 = vmatpush1.bf16.msra.mxu1 %v3632_v36  ;;  %v4115_v38 = vpop.f32.mrb[4].mxu0  ;;  %v3724_v36 = vld [vmem:[#allocation7 + $0x254] ss:$8 sps:$4 sm:$0xff]  }
 0x14f   :  { %v945_v40 = vpop.f32.mrb[5].mxu0  ;;  %2790 = vmatprep.subr.bf16.mxu1 %v3640_v37  ;;  %v3727_v37 = vld [vmem:[#allocation7 + $0x554] ss:$8 sps:$4 sm:$0xff]  }
 0x150   :  { %v947_v42 = vpop.f32.mrb[6].mxu0  ;;  %v4117_v47 = vpop.f32.mrb[4].mxu1  ;;  %v1160_v4 = vmax.f32 %v945_v40, 0.0  ;;  %v3725_v40 = vld [vmem:[#allocation7 + $0x550] ss:$8 sps:$4 sm:$0xff]  }
 0x151   :  { %v948_v43 = vpop.f32.mrb[7].mxu0  ;;  %v4119_v48 = vpop.f32.mrb[5].mxu1  ;;  %v3733_v42 = vld [vmem:[#allocation7 + $0x564] ss:$8 sps:$4 sm:$0xff]  }
 0x152   :  { %2791 = vmatpush1.bf16.msra.mxu1 %v3638_v39  ;;  %v988_v50 = vpop.f32.mrb[6].mxu1  ;;  %v1176_v14 = vpack.c.bf16 %v1160_v4, %v1160_v4  ;;  %v3722_v39 = vld [vmem:[#allocation7 + $0x250] ss:$8 sps:$4 sm:$0xff]   ;;  %v3728_v43 = vld [vmem:[#allocation7 + $0x260] ss:$8 sps:$4 sm:$0xff]  }
 0x153   :  { %2792 = vmatprep.subr.bf16.mxu1 %v3646_v41  ;;  %v989_v51 = vpop.f32.mrb[7].mxu1  ;;  %v3730_v41 = vld [vmem:[#allocation7 + $0x264] ss:$8 sps:$4 sm:$0xff]   ;;  %v3737_v50 = vld [vmem:[#allocation7 + $0x570] ss:$8 sps:$4 sm:$0xff]  }
 0x156   :  { %2793 = vmatpush1.bf16.msra.mxu1 %v3644_v44  ;;  %v3731_v44 = vld [vmem:[#allocation7 + $0x560] ss:$8 sps:$4 sm:$0xff]  }
 0x157   :  { %2794 = vmatprep.subr.bf16.mxu1 %v3652_v45  ;;  %v3736_v45 = vld [vmem:[#allocation7 + $0x274] ss:$8 sps:$4 sm:$0xff]  }
 0x15a   :  { %2795 = vmatpush1.bf16.msra.mxu1 %v3650_v46  ;;  %v3739_v46 = vld [vmem:[#allocation7 + $0x574] ss:$8 sps:$4 sm:$0xff]  }
 0x15b   :  { %2796 = vmatprep.subr.bf16.mxu1 %v3658_v2  ;;  %v3734_v2 = vld [vmem:[#allocation7 + $0x270] ss:$8 sps:$4 sm:$0xff]  }
 0x15e   :  { %2797 = vmatpush1.bf16.msra.mxu1 %v3656_v49 }
 0x15f   :  { %2798 = vmatprep.subr.bf16.mxu1 %v3664_v0  ;;  %v3742_v0 = vld [vmem:[#allocation7 + $0x284] ss:$8 sps:$4 sm:$0xff]  }
 0x162   :  { %2799 = vmatpush1.bf16.msra.mxu1 %v3662_v52  ;;  %v3745_v52 = vld [vmem:[#allocation7 + $0x584] ss:$8 sps:$4 sm:$0xff]  }
 0x163   :  { %2800 = vmatprep.subr.bf16.mxu1 %v3670_v53 }
 0x166   :  { %2801 = vmatpush1.bf16.msra.mxu1 %v3668_v54 }
 0x167   :  { %2802 = vmatprep.subr.bf16.mxu1 %v3676_v55  ;;  %v3740_v55 = vld [vmem:[#allocation7 + $0x280] ss:$8 sps:$4 sm:$0xff]  }
 0x16a   :  { %2803 = vmatpush1.bf16.msra.mxu1 %v3674_v56  ;;  %v3743_v56 = vld [vmem:[#allocation7 + $0x580] ss:$8 sps:$4 sm:$0xff]  }
 0x16b   :  { %2804 = vmatprep.subr.bf16.mxu1 %v3682_v57  ;;  %v3748_v57 = vld [vmem:[#allocation7 + $0x294] ss:$8 sps:$4 sm:$0xff]  }
 0x16e   :  { %2805 = vmatpush1.bf16.msra.mxu1 %v3680_v58  ;;  %v1025_v61 = vpop.f32.mrb[8].mxu0  ;;  %v3751_v58 = vld [vmem:[#allocation7 + $0x594] ss:$8 sps:$4 sm:$0xff]  }
 0x16f   :  { %v1163_v63 = vmax.f32 %v1025_v61, 0.0  ;;  %v1027_v1 = vpop.f32.mrb[9].mxu0  ;;  %2806 = vmatprep.subr.bf16.mxu1 %v3688_v59  ;;  %v3746_v59 = vld [vmem:[#allocation7 + $0x290] ss:$8 sps:$4 sm:$0xff]   ;;  %v3754_v61 = vld [vmem:[#allocation7 + $0x2a4] ss:$8 sps:$4 sm:$0xff]  }
 0x170   :  { %v1164_v5 = vmax.f32 %v1027_v1, 0.0  ;;  %v1029_v6 = vpop.f32.mrb[10].mxu0  ;;  %v4122_v20 = vpop.f32.mrb[8].mxu1 }
 0x171   :  { %v1030_v8 = vpop.f32.mrb[11].mxu0  ;;  %v1179_v11 = vpack.c.bf16 %v1163_v63, %v1163_v63  ;;  %v1068_v21 = vpop.f32.mrb[9].mxu1  ;;  %v3760_v6 = vld [vmem:[#allocation7 + $0x2b4] ss:$8 sps:$4 sm:$0xff]  }
 0x172   :  { %v1180_v9 = vpack.c.bf16 %v1164_v5, %v1164_v5  ;;  %2807 = vmatpush1.bf16.msra.mxu1 %v3686_v62  ;;  %v1166_v23 = vmax.f32 %v1068_v21, 0.0  ;;  %v1070_v24 = vpop.f32.mrb[10].mxu1  ;;  %v3757_v62 = vld [vmem:[#allocation7 + $0x5a4] ss:$8 sps:$4 sm:$0xff]   ;;  %v3755_v5 = vld [vmem:[#allocation7 + $0x5a0] ss:$8 sps:$4 sm:$0xff]  }
 0x173   :  { %2817 = vmatprep.subr.bf16.mxu1 %v3694_v3  ;;  %v1071_v27 = vpop.f32.mrb[11].mxu1  ;;  %v3752_v3 = vld [vmem:[#allocation7 + $0x2a0] ss:$8 sps:$4 sm:$0xff]   ;;  %v3763_v8 = vld [vmem:[#allocation7 + $0x5b4] ss:$8 sps:$4 sm:$0xff]  }
 0x174   :  { %2931 = vmatprep.mubr.bf16.mxu0 %v1180_v9  ;;  %v1182_v29 = vpack.c.bf16 %v1166_v23, %v1166_v23  ;;  %v3758_v9 = vld [vmem:[#allocation7 + $0x2b0] ss:$8 sps:$4 sm:$0xff]   ;;  %v3781_v21 = vld [vmem:[#allocation7 + $0x5e4] ss:$8 sps:$4 sm:$0xff]   ;;  %v3779_v23 = vld [vmem:[#allocation7 + $0x5e0] ss:$8 sps:$4 sm:$0xff]  }
 0x175   :  { %2809 = vmatmul.mubr.bf16.vlgmr.msra.gmra.mrb[16].mxu1 %v1173_v7  ;;  %2932 = vmatmul.mubr.bf16.vlgmr.msra.gmra.mrb[16].mxu0 %v1179_v11  ;;  %v3766_v11 = vld [vmem:[#allocation7 + $0x2c4] ss:$8 sps:$4 sm:$0xff]   ;;  %v3784_v24 = vld [vmem:[#allocation7 + $0x2f4] ss:$8 sps:$4 sm:$0xff]   ;;  %v3782_v27 = vld [vmem:[#allocation7 + $0x2f0] ss:$8 sps:$4 sm:$0xff]  }
 0x176   :  { %2818 = vmatpush1.bf16.msra.mxu1 %v3692_v10  ;;  %2849 = vmatprep.mubr.bf16.mxu1 %v1176_v14  ;;  %v3761_v10 = vld [vmem:[#allocation7 + $0x5b0] ss:$8 sps:$4 sm:$0xff]   ;;  %v3767_v14 = vld [vmem:[#allocation7 + $0x5c0] ss:$8 sps:$4 sm:$0xff]  }
 0x177   :  { %2941 = vmatpush1.bf16.msra.mxu0 %v3695_v12  ;;  %2819 = vmatprep.subr.bf16.mxu1 %v3700_v13  ;;  %v3769_v12 = vld [vmem:[#allocation7 + $0x5c4] ss:$8 sps:$4 sm:$0xff]   ;;  %v3764_v13 = vld [vmem:[#allocation7 + $0x2c0] ss:$8 sps:$4 sm:$0xff]  }
 0x178   :  { %2942 = vmatprep.subr.bf16.mxu0 %v3703_v15  ;;  %2972 = vmatprep.mubr.bf16.mxu0 %v1182_v29  ;;  %v3772_v15 = vld [vmem:[#allocation7 + $0x2d4] ss:$8 sps:$4 sm:$0xff]   ;;  %v3785_v29 = vld [vmem:[#allocation7 + $0x5f0] ss:$8 sps:$4 sm:$0xff]  }
 0x17a   :  { %2820 = vmatpush1.bf16.msra.mxu1 %v3698_v16  ;;  %v3775_v16 = vld [vmem:[#allocation7 + $0x5d4] ss:$8 sps:$4 sm:$0xff]  }
 0x17b   :  { %2943 = vmatpush1.bf16.msra.mxu0 %v3701_v17  ;;  %2821 = vmatprep.subr.bf16.mxu1 %v3706_v18  ;;  %v3770_v17 = vld [vmem:[#allocation7 + $0x2d0] ss:$8 sps:$4 sm:$0xff]  }
 0x17c   :  { %2944 = vmatprep.subr.bf16.mxu0 %v3709_v19  ;;  %v3773_v18 = vld [vmem:[#allocation7 + $0x5d0] ss:$8 sps:$4 sm:$0xff]   ;;  %v3778_v19 = vld [vmem:[#allocation7 + $0x2e4] ss:$8 sps:$4 sm:$0xff]  }
 0x17e   :  { %2822 = vmatpush1.bf16.msra.mxu1 %v3704_v22  ;;  %v3776_v22 = vld [vmem:[#allocation7 + $0x2e0] ss:$8 sps:$4 sm:$0xff]  }
 0x17f   :  { %2945 = vmatpush1.bf16.msra.mxu0 %v3707_v25  ;;  %2823 = vmatprep.subr.bf16.mxu1 %v3712_v26  ;;  %v3787_v25 = vld [vmem:[#allocation7 + $0x5f4] ss:$8 sps:$4 sm:$0xff]   ;;  %v1165_v26 = vmax.f32 %v4122_v20, 0.0  ;;  %v3791_v20 = vld [vmem:[#allocation7 + $0x600] ss:$8 sps:$4 sm:$0xff]  }
 0x180   :  { %2946 = vmatprep.subr.bf16.mxu0 %v3715_v28  ;;  %v1159_v28 = vmax.f32 %v4115_v38, 0.0  ;;  %v3799_v38 = vld [vmem:[#allocation7 + $0x614] ss:$8 sps:$4 sm:$0xff]  }
 0x182   :  { %2824 = vmatpush1.bf16.msra.mxu1 %v3710_v30  ;;  %v3790_v30 = vld [vmem:[#allocation7 + $0x304] ss:$8 sps:$4 sm:$0xff]  }
 0x183   :  { %2947 = vmatpush1.bf16.msra.mxu0 %v3713_v31  ;;  %2825 = vmatprep.subr.bf16.mxu1 %v3718_v32  ;;  %v3793_v31 = vld [vmem:[#allocation7 + $0x604] ss:$8 sps:$4 sm:$0xff]   ;;  %v1162_v32 = vmax.f32 %v4119_v48, 0.0  ;;  %v3797_v48 = vld [vmem:[#allocation7 + $0x610] ss:$8 sps:$4 sm:$0xff]  }
 0x184   :  { %2948 = vmatprep.subr.bf16.mxu0 %v3721_v33 }
 0x186   :  { %2826 = vmatpush1.bf16.msra.mxu1 %v3716_v34  ;;  %v1181_v34 = vpack.c.bf16 %v1165_v26, %v1165_v26  ;;  %v3860_v26 = vld [vmem:[#allocation7 + $0x3c0] ss:$8 sps:$4 sm:$0xff]  }
 0x187   :  { %2949 = vmatpush1.bf16.msra.mxu0 %v3719_v35  ;;  %2827 = vmatprep.subr.bf16.mxu1 %v3724_v36  ;;  %v3788_v35 = vld [vmem:[#allocation7 + $0x300] ss:$8 sps:$4 sm:$0xff]   ;;  %v1175_v36 = vpack.c.bf16 %v1159_v28, %v1159_v28  ;;  %v3868_v28 = vld [vmem:[#allocation7 + $0x3d4] ss:$8 sps:$4 sm:$0xff]  }
 0x188   :  { %2950 = vmatprep.subr.bf16.mxu0 %v3727_v37  ;;  %v3796_v37 = vld [vmem:[#allocation7 + $0x314] ss:$8 sps:$4 sm:$0xff]  }
 0x18a   :  { %2828 = vmatpush1.bf16.msra.mxu1 %v3722_v39  ;;  %v1178_v39 = vpack.c.bf16 %v1162_v32, %v1162_v32  ;;  %v3874_v32 = vld [vmem:[#allocation7 + $0x3e4] ss:$8 sps:$4 sm:$0xff]  }
 0x18b   :  { %2951 = vmatpush1.bf16.msra.mxu0 %v3725_v40  ;;  %2829 = vmatprep.subr.bf16.mxu1 %v3730_v41  ;;  %v3794_v41 = vld [vmem:[#allocation7 + $0x310] ss:$8 sps:$4 sm:$0xff]  }
 0x18c   :  { %2952 = vmatprep.subr.bf16.mxu0 %v3733_v42  ;;  %v3802_v42 = vld [vmem:[#allocation7 + $0x324] ss:$8 sps:$4 sm:$0xff]  }
 0x18e   :  { %2830 = vmatpush1.bf16.msra.mxu1 %v3728_v43  ;;  %v4124_v49 = vpop.f32.mrb[12].mxu0  ;;  %v3805_v43 = vld [vmem:[#allocation7 + $0x624] ss:$8 sps:$4 sm:$0xff]  }
 0x18f   :  { %2953 = vmatpush1.bf16.msra.mxu0 %v3731_v44  ;;  %2831 = vmatprep.subr.bf16.mxu1 %v3736_v45  ;;  %v4126_v51 = vpop.f32.mrb[13].mxu0  ;;  %v3800_v44 = vld [vmem:[#allocation7 + $0x320] ss:$8 sps:$4 sm:$0xff]  }
 0x190   :  { %2954 = vmatprep.subr.bf16.mxu0 %v3739_v46  ;;  %v1111_v53 = vpop.f32.mrb[14].mxu0  ;;  %v4128_v63 = vpop.f32.mrb[12].mxu1  ;;  %v1168_v33 = vmax.f32 %v4126_v51, 0.0  ;;  %v3803_v45 = vld [vmem:[#allocation7 + $0x620] ss:$8 sps:$4 sm:$0xff]  }
 0x191   :  { %v1112_v54 = vpop.f32.mrb[15].mxu0  ;;  %v4130_v1 = vpop.f32.mrb[13].mxu1  ;;  %v3808_v46 = vld [vmem:[#allocation7 + $0x334] ss:$8 sps:$4 sm:$0xff]   ;;  %v3814_v51 = vld [vmem:[#allocation7 + $0x344] ss:$8 sps:$4 sm:$0xff]  }
 0x192   :  { %2832 = vmatpush1.bf16.msra.mxu1 %v3734_v2  ;;  %v1152_v4 = vpop.f32.mrb[14].mxu1  ;;  %v1184_v40 = vpack.c.bf16 %v1168_v33, %v1168_v33  ;;  %v3811_v2 = vld [vmem:[#allocation7 + $0x634] ss:$8 sps:$4 sm:$0xff]   ;;  %v3812_v53 = vld [vmem:[#allocation7 + $0x340] ss:$8 sps:$4 sm:$0xff]  }
 0x193   :  { %2955 = vmatpush1.bf16.msra.mxu0 %v3737_v50  ;;  %2833 = vmatprep.subr.bf16.mxu1 %v3742_v0  ;;  %v1153_v7 = vpop.f32.mrb[15].mxu1  ;;  %v3806_v50 = vld [vmem:[#allocation7 + $0x330] ss:$8 sps:$4 sm:$0xff]   ;;  %v3815_v54 = vld [vmem:[#allocation7 + $0x640] ss:$8 sps:$4 sm:$0xff]  }
 0x194   :  { %2956 = vmatprep.subr.bf16.mxu0 %v3745_v52  ;;  %v3809_v0 = vld [vmem:[#allocation7 + $0x630] ss:$8 sps:$4 sm:$0xff]   ;;  %v3817_v52 = vld [vmem:[#allocation7 + $0x644] ss:$8 sps:$4 sm:$0xff]   ;;  %v3835_v4 = vld [vmem:[#allocation7 + $0x674] ss:$8 sps:$4 sm:$0xff]  }
 0x195   :  { %v3838_v7 = vld [vmem:[#allocation7 + $0x384] ss:$8 sps:$4 sm:$0xff]  }
 0x196   :  { %2834 = vmatpush1.bf16.msra.mxu1 %v3740_v55  ;;  %v3820_v55 = vld [vmem:[#allocation7 + $0x354] ss:$8 sps:$4 sm:$0xff]   ;;  %v3877_v33 = vld [vmem:[#allocation7 + $0x6e4] ss:$8 sps:$4 sm:$0xff]  }
 0x197   :  { %2957 = vmatpush1.bf16.msra.mxu0 %v3743_v56  ;;  %2835 = vmatprep.subr.bf16.mxu1 %v3748_v57  ;;  %v3823_v56 = vld [vmem:[#allocation7 + $0x654] ss:$8 sps:$4 sm:$0xff]   ;;  %v3818_v57 = vld [vmem:[#allocation7 + $0x350] ss:$8 sps:$4 sm:$0xff]  }
 0x198   :  { %2958 = vmatprep.subr.bf16.mxu0 %v3751_v58  ;;  %v3821_v58 = vld [vmem:[#allocation7 + $0x650] ss:$8 sps:$4 sm:$0xff]  }
 0x19a   :  { %2836 = vmatpush1.bf16.msra.mxu1 %v3746_v59  ;;  %v3826_v59 = vld [vmem:[#allocation7 + $0x364] ss:$8 sps:$4 sm:$0xff]  }
 0x19b   :  { %2959 = vmatpush1.bf16.msra.mxu0 %v3749_v60  ;;  %2837 = vmatprep.subr.bf16.mxu1 %v3754_v61  ;;  %v3829_v60 = vld [vmem:[#allocation7 + $0x664] ss:$8 sps:$4 sm:$0xff]   ;;  %v3824_v61 = vld [vmem:[#allocation7 + $0x360] ss:$8 sps:$4 sm:$0xff]  }
 0x19c   :  { %2960 = vmatprep.subr.bf16.mxu0 %v3757_v62  ;;  %v3827_v62 = vld [vmem:[#allocation7 + $0x660] ss:$8 sps:$4 sm:$0xff]  }
 0x19e   :  { %2838 = vmatpush1.bf16.msra.mxu1 %v3752_v3  ;;  %v3832_v3 = vld [vmem:[#allocation7 + $0x374] ss:$8 sps:$4 sm:$0xff]  }
 0x19f   :  { %2961 = vmatpush1.bf16.msra.mxu0 %v3755_v5  ;;  %2839 = vmatprep.subr.bf16.mxu1 %v3760_v6  ;;  %v3830_v5 = vld [vmem:[#allocation7 + $0x370] ss:$8 sps:$4 sm:$0xff]  }
 0x1a0   :  { %2962 = vmatprep.subr.bf16.mxu0 %v3763_v8  ;;  %v3833_v6 = vld [vmem:[#allocation7 + $0x670] ss:$8 sps:$4 sm:$0xff]   ;;  %v3841_v8 = vld [vmem:[#allocation7 + $0x684] ss:$8 sps:$4 sm:$0xff]  }
 0x1a2   :  { %2840 = vmatpush1.bf16.msra.mxu1 %v3758_v9  ;;  %v3836_v9 = vld [vmem:[#allocation7 + $0x380] ss:$8 sps:$4 sm:$0xff]  }
 0x1a3   :  { %2963 = vmatpush1.bf16.msra.mxu0 %v3761_v10  ;;  %2841 = vmatprep.subr.bf16.mxu1 %v3766_v11  ;;  %v3839_v10 = vld [vmem:[#allocation7 + $0x680] ss:$8 sps:$4 sm:$0xff]   ;;  %v3844_v11 = vld [vmem:[#allocation7 + $0x394] ss:$8 sps:$4 sm:$0xff]  }
 0x1a4   :  { %2964 = vmatprep.subr.bf16.mxu0 %v3769_v12  ;;  %v3847_v12 = vld [vmem:[#allocation7 + $0x694] ss:$8 sps:$4 sm:$0xff]  }
 0x1a6   :  { %2842 = vmatpush1.bf16.msra.mxu1 %v3764_v13  ;;  %v3842_v13 = vld [vmem:[#allocation7 + $0x390] ss:$8 sps:$4 sm:$0xff]  }
 0x1a7   :  { %2965 = vmatpush1.bf16.msra.mxu0 %v3767_v14  ;;  %2843 = vmatprep.subr.bf16.mxu1 %v3772_v15  ;;  %v3845_v14 = vld [vmem:[#allocation7 + $0x690] ss:$8 sps:$4 sm:$0xff]   ;;  %v3850_v15 = vld [vmem:[#allocation7 + $0x3a4] ss:$8 sps:$4 sm:$0xff]  }
 0x1a8   :  { %2966 = vmatprep.subr.bf16.mxu0 %v3775_v16  ;;  %v3853_v16 = vld [vmem:[#allocation7 + $0x6a4] ss:$8 sps:$4 sm:$0xff]  }
 0x1aa   :  { %2844 = vmatpush1.bf16.msra.mxu1 %v3770_v17  ;;  %v3848_v17 = vld [vmem:[#allocation7 + $0x3a0] ss:$8 sps:$4 sm:$0xff]  }
 0x1ab   :  { %2967 = vmatpush1.bf16.msra.mxu0 %v3773_v18  ;;  %2845 = vmatprep.subr.bf16.mxu1 %v3778_v19  ;;  %v3851_v18 = vld [vmem:[#allocation7 + $0x6a0] ss:$8 sps:$4 sm:$0xff]   ;;  %v3856_v19 = vld [vmem:[#allocation7 + $0x3b4] ss:$8 sps:$4 sm:$0xff]  }
 0x1ac   :  { %2968 = vmatprep.subr.bf16.mxu0 %v3781_v21  ;;  %v3859_v21 = vld [vmem:[#allocation7 + $0x6b4] ss:$8 sps:$4 sm:$0xff]  }
 0x1ae   :  { %2846 = vmatpush1.bf16.msra.mxu1 %v3776_v22  ;;  %v3854_v22 = vld [vmem:[#allocation7 + $0x3b0] ss:$8 sps:$4 sm:$0xff]  }
 0x1af   :  { %2969 = vmatpush1.bf16.msra.mxu0 %v3779_v23  ;;  %2847 = vmatprep.subr.bf16.mxu1 %v3784_v24  ;;  %v3857_v23 = vld [vmem:[#allocation7 + $0x6b0] ss:$8 sps:$4 sm:$0xff]   ;;  %v3862_v24 = vld [vmem:[#allocation7 + $0x3c4] ss:$8 sps:$4 sm:$0xff]  }
 0x1b0   :  { %2970 = vmatprep.subr.bf16.mxu0 %v3787_v25  ;;  %v3865_v25 = vld [vmem:[#allocation7 + $0x6c4] ss:$8 sps:$4 sm:$0xff]  }
 0x1b2   :  { %2848 = vmatpush1.bf16.msra.mxu1 %v3782_v27  ;;  %v3863_v27 = vld [vmem:[#allocation7 + $0x6c0] ss:$8 sps:$4 sm:$0xff]  }
 0x1b3   :  { %2971 = vmatpush1.bf16.msra.mxu0 %v3785_v29  ;;  %2858 = vmatprep.subr.bf16.mxu1 %v3790_v30  ;;  %v3871_v29 = vld [vmem:[#allocation7 + $0x6d4] ss:$8 sps:$4 sm:$0xff]   ;;  %v3866_v30 = vld [vmem:[#allocation7 + $0x3d0] ss:$8 sps:$4 sm:$0xff]  }
 0x1b4   :  { %2981 = vmatprep.subr.bf16.mxu0 %v3793_v31  ;;  %v3869_v31 = vld [vmem:[#allocation7 + $0x6d0] ss:$8 sps:$4 sm:$0xff]  }
 0x1b5   :  { %2850 = vmatmul.mubr.bf16.vlgmr.msra.gmra.mrb[16].mxu1 %v1175_v36  ;;  %v3880_v36 = vld [vmem:[#allocation7 + $0x3f4] ss:$8 sps:$4 sm:$0xff]  }
 0x1b6   :  { %2973 = vmatmul.mubr.bf16.vlgmr.msra.gmra.mrb[16].mxu0 %v1181_v34  ;;  %2859 = vmatpush1.bf16.msra.mxu1 %v3788_v35  ;;  %v3872_v34 = vld [vmem:[#allocation7 + $0x3e0] ss:$8 sps:$4 sm:$0xff]  }
 0x1b7   :  { %2890 = vmatprep.mubr.bf16.mxu1 %v1178_v39  ;;  %2982 = vmatpush1.bf16.msra.mxu0 %v3791_v20  ;;  %v3875_v35 = vld [vmem:[#allocation7 + $0x6e0] ss:$8 sps:$4 sm:$0xff]   ;;  %v3883_v20 = vld [vmem:[#allocation7 + $0x6f4] ss:$8 sps:$4 sm:$0xff]   ;;  %v1161_v39 = vmax.f32 %v4117_v47, 0.0 }
 0x1b8   :  { %2860 = vmatprep.subr.bf16.mxu1 %v3796_v37  ;;  %2983 = vmatprep.subr.bf16.mxu0 %v3799_v38  ;;  %v1167_v37 = vmax.f32 %v4124_v49, 0.0  ;;  %v3878_v38 = vld [vmem:[#allocation7 + $0x3f0] ss:$8 sps:$4 sm:$0xff]   ;;  %v3892_v47 = vld [vmem:[#allocation7 + $0x724] ss:$8 sps:$4 sm:$0xff]  }
 0x1b9   :  { %3013 = vmatprep.mubr.bf16.mxu0 %v1184_v40  ;;  %v3881_v40 = vld [vmem:[#allocation7 + $0x6f0] ss:$8 sps:$4 sm:$0xff]  }
 0x1ba   :  { %2861 = vmatpush1.bf16.msra.mxu1 %v3794_v41  ;;  %v1170_v41 = vmax.f32 %v4130_v1, 0.0  ;;  %v3887_v49 = vld [vmem:[#allocation7 + $0x710] ss:$8 sps:$4 sm:$0xff]   ;;  %v3895_v1 = vld [vmem:[#allocation7 + $0x734] ss:$8 sps:$4 sm:$0xff]  }
 0x1bb   :  { %2984 = vmatpush1.bf16.msra.mxu0 %v3797_v48  ;;  %2862 = vmatprep.subr.bf16.mxu1 %v3802_v42  ;;  %v3886_v48 = vld [vmem:[#allocation7 + $0x704] ss:$8 sps:$4 sm:$0xff]   ;;  %v1183_v42 = vpack.c.bf16 %v1167_v37, %v1167_v37 }
 0x1bc   :  { %2985 = vmatprep.subr.bf16.mxu0 %v3805_v43  ;;  %v1177_v43 = vpack.c.bf16 %v1161_v39, %v1161_v39 }
 0x1be   :  { %2863 = vmatpush1.bf16.msra.mxu1 %v3800_v44  ;;  %v3884_v44 = vld [vmem:[#allocation7 + $0x700] ss:$8 sps:$4 sm:$0xff]  }
 0x1bf   :  { %2986 = vmatpush1.bf16.msra.mxu0 %v3803_v45  ;;  %2864 = vmatprep.subr.bf16.mxu1 %v3808_v46  ;;  %v1186_v45 = vpack.c.bf16 %v1170_v41, %v1170_v41  ;;  %v3889_v46 = vld [vmem:[#allocation7 + $0x714] ss:$8 sps:$4 sm:$0xff]  }
 0x1c0   :  { %2987 = vmatprep.subr.bf16.mxu0 %v3811_v2  ;;  %v3890_v2 = vld [vmem:[#allocation7 + $0x720] ss:$8 sps:$4 sm:$0xff]  }
 0x1c2   :  { %2865 = vmatpush1.bf16.msra.mxu1 %v3806_v50  ;;  %v3893_v50 = vld [vmem:[#allocation7 + $0x730] ss:$8 sps:$4 sm:$0xff]  }
 0x1c3   :  { %2988 = vmatpush1.bf16.msra.mxu0 %v3809_v0  ;;  %2866 = vmatprep.subr.bf16.mxu1 %v3814_v51  ;;  %v3898_v0 = vld [vmem:[#allocation7 + $0x744] ss:$8 sps:$4 sm:$0xff]   ;;  %v3896_v51 = vld [vmem:[#allocation7 + $0x740] ss:$8 sps:$4 sm:$0xff]  }
 0x1c4   :  { %2989 = vmatprep.subr.bf16.mxu0 %v3817_v52  ;;  %v3901_v52 = vld [vmem:[#allocation7 + $0x754] ss:$8 sps:$4 sm:$0xff]  }
 0x1c6   :  { %2867 = vmatpush1.bf16.msra.mxu1 %v3812_v53  ;;  %v3899_v53 = vld [vmem:[#allocation7 + $0x750] ss:$8 sps:$4 sm:$0xff]  }
 0x1c7   :  { %2990 = vmatpush1.bf16.msra.mxu0 %v3815_v54  ;;  %2868 = vmatprep.subr.bf16.mxu1 %v3820_v55  ;;  %v3904_v54 = vld [vmem:[#allocation7 + $0x764] ss:$8 sps:$4 sm:$0xff]   ;;  %v3902_v55 = vld [vmem:[#allocation7 + $0x760] ss:$8 sps:$4 sm:$0xff]  }
 0x1c8   :  { %2991 = vmatprep.subr.bf16.mxu0 %v3823_v56  ;;  %v3907_v56 = vld [vmem:[#allocation7 + $0x774] ss:$8 sps:$4 sm:$0xff]  }
 0x1ca   :  { %2869 = vmatpush1.bf16.msra.mxu1 %v3818_v57  ;;  %v3905_v57 = vld [vmem:[#allocation7 + $0x770] ss:$8 sps:$4 sm:$0xff]  }
 0x1cb   :  { %2992 = vmatpush1.bf16.msra.mxu0 %v3821_v58  ;;  %2870 = vmatprep.subr.bf16.mxu1 %v3826_v59  ;;  %v3910_v58 = vld [vmem:[#allocation7 + $0x784] ss:$8 sps:$4 sm:$0xff]   ;;  %v3908_v59 = vld [vmem:[#allocation7 + $0x780] ss:$8 sps:$4 sm:$0xff]  }
 0x1cc   :  { %2993 = vmatprep.subr.bf16.mxu0 %v3829_v60  ;;  %v3913_v60 = vld [vmem:[#allocation7 + $0x794] ss:$8 sps:$4 sm:$0xff]  }
 0x1ce   :  { %2871 = vmatpush1.bf16.msra.mxu1 %v3824_v61  ;;  %v3911_v61 = vld [vmem:[#allocation7 + $0x790] ss:$8 sps:$4 sm:$0xff]  }
 0x1cf   :  { %2994 = vmatpush1.bf16.msra.mxu0 %v3827_v62  ;;  %2872 = vmatprep.subr.bf16.mxu1 %v3832_v3  ;;  %v3916_v62 = vld [vmem:[#allocation7 + $0x7a4] ss:$8 sps:$4 sm:$0xff]   ;;  %v3914_v3 = vld [vmem:[#allocation7 + $0x7a0] ss:$8 sps:$4 sm:$0xff]  }
 0x1d0   :  { %2995 = vmatprep.subr.bf16.mxu0 %v3835_v4  ;;  %v3919_v4 = vld [vmem:[#allocation7 + $0x7b4] ss:$8 sps:$4 sm:$0xff]  }
 0x1d2   :  { %2873 = vmatpush1.bf16.msra.mxu1 %v3830_v5  ;;  %v3917_v5 = vld [vmem:[#allocation7 + $0x7b0] ss:$8 sps:$4 sm:$0xff]  }
 0x1d3   :  { %2996 = vmatpush1.bf16.msra.mxu0 %v3833_v6  ;;  %2874 = vmatprep.subr.bf16.mxu1 %v3838_v7  ;;  %v3922_v6 = vld [vmem:[#allocation7 + $0x7c4] ss:$8 sps:$4 sm:$0xff]   ;;  %v3920_v7 = vld [vmem:[#allocation7 + $0x7c0] ss:$8 sps:$4 sm:$0xff]  }
 0x1d4   :  { %2997 = vmatprep.subr.bf16.mxu0 %v3841_v8  ;;  %v3925_v8 = vld [vmem:[#allocation7 + $0x7d4] ss:$8 sps:$4 sm:$0xff]  }
 0x1d6   :  { %2875 = vmatpush1.bf16.msra.mxu1 %v3836_v9  ;;  %v3923_v9 = vld [vmem:[#allocation7 + $0x7d0] ss:$8 sps:$4 sm:$0xff]  }
 0x1d7   :  { %2998 = vmatpush1.bf16.msra.mxu0 %v3839_v10  ;;  %2876 = vmatprep.subr.bf16.mxu1 %v3844_v11  ;;  %v3928_v10 = vld [vmem:[#allocation7 + $0x7e4] ss:$8 sps:$4 sm:$0xff]   ;;  %v3926_v11 = vld [vmem:[#allocation7 + $0x7e0] ss:$8 sps:$4 sm:$0xff]  }
 0x1d8   :  { %2999 = vmatprep.subr.bf16.mxu0 %v3847_v12  ;;  %v3931_v12 = vld [vmem:[#allocation7 + $0x7f4] ss:$8 sps:$4 sm:$0xff]  }
 0x1da   :  { %2877 = vmatpush1.bf16.msra.mxu1 %v3842_v13  ;;  %v3929_v13 = vld [vmem:[#allocation7 + $0x7f0] ss:$8 sps:$4 sm:$0xff]  }
 0x1db   :  { %3000 = vmatpush1.bf16.msra.mxu0 %v3845_v14  ;;  %2878 = vmatprep.subr.bf16.mxu1 %v3850_v15  ;;  %v1169_v14 = vmax.f32 %v4128_v63, 0.0 }
 0x1dc   :  { %3001 = vmatprep.subr.bf16.mxu0 %v3853_v16 }
 0x1dd   :  { %v1185_v15 = vpack.c.bf16 %v1169_v14, %v1169_v14 }
 0x1de   :  { %2879 = vmatpush1.bf16.msra.mxu1 %v3848_v17 }
 0x1df   :  { %3002 = vmatpush1.bf16.msra.mxu0 %v3851_v18  ;;  %2880 = vmatprep.subr.bf16.mxu1 %v3856_v19 }
 0x1e0   :  { %3003 = vmatprep.subr.bf16.mxu0 %v3859_v21  ;;  %v1445_v21 = vlaneseq }
 0x1e2   :  { %2881 = vmatpush1.bf16.msra.mxu1 %v3854_v22  ;;  %v1446_v22 = vshrl.u32 %v1445_v21, 7 }
 0x1e3   :  { %3004 = vmatpush1.bf16.msra.mxu0 %v3857_v23  ;;  %2882 = vmatprep.subr.bf16.mxu1 %v3862_v24  ;;  %v1443_v24 = vld [vmem:[%s4158_s3] sm:$0x3]  ;;  %s4035_s3 = smov [#allocation8]  }
 0x1e4   :  { %3005 = vmatprep.subr.bf16.mxu0 %v3865_v25  ;;  %v1447_v23 = vsub.s32 0, %v1446_v22  ;;  %v1451_v25 = vsub.s32 1, %v1446_v22  ;;  %s3117_s28 = sshll.u32 %s4035_s3, 4  ;;  %s3118_s28 = int_to_ptr.vmem [resolvable:$true] %s3117_s28 }
 0x1e5   :  { %s3999_s29 = scalar_lea.vmem %s3118_s28, 256  ;;  %p4004_p11 = scmp.lt.s32.totalorder %s3118_s28, %s3118_s28 }
 0x1e6   :  { %2883 = vmatpush1.bf16.msra.mxu1 %v3860_v26  ;;  %v1448_v26 = vrot.slane %v1443_v24, %v1447_v23  ;;  %p4000_p10 = scmp.ne.s32.totalorder %s3118_s28, %s3999_s29  ;;  %p4005_p12 = scmp.lt.s32.totalorder %s3999_s29, %s3999_s29 }
 0x1e7   :  { %3006 = vmatpush1.bf16.msra.mxu0 %v3863_v27  ;;  %2884 = vmatprep.subr.bf16.mxu1 %v3868_v28  ;;  %v1452_v27 = vrot.slane %v1443_v24, %v1451_v25  ;;  %v3064_v28 = vand.u32 127, %v1445_v21 }
 0x1e8   :  { %3007 = vmatprep.subr.bf16.mxu0 %v3871_v29  ;;  %p4006_p13 = por %p4005_p12, %p4004_p11 }
 0x1e9   :  { %vm3065_vm0 = vcmp.lt.s32.totalorder %v3064_v28, 3  ;;  %vm3086_vm5 = vcmp.eq.s32.totalorder %v3064_v28, 7 }
 0x1ea   :  { %2885 = vmatpush1.bf16.msra.mxu1 %v3866_v30  ;;  %p4007_p0 = pnand %p4006_p13, %p4000_p10 }
 0x1eb   :  { %3008 = vmatpush1.bf16.msra.mxu0 %v3869_v31  ;;  %2886 = vmatprep.subr.bf16.mxu1 %v3874_v32 }
 0x1ec   :  { %3009 = vmatprep.subr.bf16.mxu0 %v3877_v33 }
 0x1ee   :  { %2887 = vmatpush1.bf16.msra.mxu1 %v3872_v34 }
 0x1ef   :  { %3010 = vmatpush1.bf16.msra.mxu0 %v3875_v35  ;;  %2888 = vmatprep.subr.bf16.mxu1 %v3880_v36 }
 0x1f0   :  { %3011 = vmatprep.subr.bf16.mxu0 %v3883_v20 }
 0x1f2   :  { %2889 = vmatpush1.bf16.msra.mxu1 %v3878_v38 }
 0x1f3   :  { %3012 = vmatpush1.bf16.msra.mxu0 %v3881_v40 }
 0x1f4   :  { %3022 = vmatprep.subr.bf16.mxu0 %v3886_v48 }
 0x1f5   :  { %2891 = vmatmul.mubr.bf16.vlgmr.msra.gmra.mrb[16].mxu1 %v1177_v43 }
 0x1f6   :  { %3014 = vmatmul.mubr.bf16.vlgmr.msra.gmra.mrb[16].mxu0 %v1183_v42 }
 0x1f7   :  { %3023 = vmatpush1.bf16.msra.mxu0 %v3884_v44  ;;  %3054 = vmatprep.mubr.bf16.mxu0 %v1186_v45 }
 0x1f8   :  { %3024 = vmatprep.subr.bf16.mxu0 %v3889_v46 }
 0x1fb   :  { %3025 = vmatpush1.bf16.msra.mxu0 %v3887_v49 }
 0x1fc   :  { %3026 = vmatprep.subr.bf16.mxu0 %v3892_v47 }
 0x1ff   :  { %3027 = vmatpush1.bf16.msra.mxu0 %v3890_v2 }
 0x200   :  { %3028 = vmatprep.subr.bf16.mxu0 %v3895_v1 }
 0x203   :  { %3029 = vmatpush1.bf16.msra.mxu0 %v3893_v50 }
 0x204   :  { %3030 = vmatprep.subr.bf16.mxu0 %v3898_v0 }
 0x207   :  { %3031 = vmatpush1.bf16.msra.mxu0 %v3896_v51 }
 0x208   :  { %3032 = vmatprep.subr.bf16.mxu0 %v3901_v52 }
 0x20b   :  { %3033 = vmatpush1.bf16.msra.mxu0 %v3899_v53 }
 0x20c   :  { %3034 = vmatprep.subr.bf16.mxu0 %v3904_v54 }
 0x20f   :  { %3035 = vmatpush1.bf16.msra.mxu0 %v3902_v55 }
 0x210   :  { %3036 = vmatprep.subr.bf16.mxu0 %v3907_v56 }
 0x213   :  { %3037 = vmatpush1.bf16.msra.mxu0 %v3905_v57 }
 0x214   :  { %3038 = vmatprep.subr.bf16.mxu0 %v3910_v58 }
 0x217   :  { %3039 = vmatpush1.bf16.msra.mxu0 %v3908_v59 }
 0x218   :  { %3040 = vmatprep.subr.bf16.mxu0 %v3913_v60 }
 0x21b   :  { %3041 = vmatpush1.bf16.msra.mxu0 %v3911_v61 }
 0x21c   :  { %3042 = vmatprep.subr.bf16.mxu0 %v3916_v62 }
 0x21f   :  { %3043 = vmatpush1.bf16.msra.mxu0 %v3914_v3 }
 0x220   :  { %3044 = vmatprep.subr.bf16.mxu0 %v3919_v4 }
 0x223   :  { %3045 = vmatpush1.bf16.msra.mxu0 %v3917_v5 }
 0x224   :  { %3046 = vmatprep.subr.bf16.mxu0 %v3922_v6 }
 0x227   :  { %3047 = vmatpush1.bf16.msra.mxu0 %v3920_v7 }
 0x228   :  { %3048 = vmatprep.subr.bf16.mxu0 %v3925_v8 }
 0x22b   :  { %3049 = vmatpush1.bf16.msra.mxu0 %v3923_v9 }
 0x22c   :  { %3050 = vmatprep.subr.bf16.mxu0 %v3928_v10 }
 0x22f   :  { %3051 = vmatpush1.bf16.msra.mxu0 %v3926_v11 }
 0x230   :  { %3052 = vmatprep.subr.bf16.mxu0 %v3931_v12 }
 0x233   :  { %3053 = vmatpush1.bf16.msra.mxu0 %v3929_v13 }
 0x236   :  { %3055 = vmatmul.mubr.bf16.vlgmr.msra.gmra.mrb[16].mxu0 %v1185_v15 }
 0x2c8   :  { %v2892_v16 = vpop.f32.mrb[16].mxu1 }
 0x2c9   :  { %v2894_v17 = vpop.f32.mrb[17].mxu1  ;;  %v3511_v63 = vadd.f32 %v2892_v16, %v1448_v26 }
 0x2ca   :  { %v2896_v18 = vpop.f32.mrb[18].mxu1  ;;  %v3513_v29 = vadd.f32 %v2894_v17, %v1452_v27 }
 0x2cb   :  { %v2897_v19 = vpop.f32.mrb[19].mxu1 }
 0x309   :  { %v3056_v30 = vpop.f32.mrb[16].mxu0 }
 0x30a   :  { %v3512_v31 = vadd.f32 %v3511_v63, %v3056_v30  ;;  %v3058_v32 = vpop.f32.mrb[17].mxu0 }
 0x30b   :  { %v3514_v33 = vadd.f32 %v3513_v29, %v3058_v32  ;;  %v3060_v34 = vpop.f32.mrb[18].mxu0 }
 0x30c   :  { %v3061_v35 = vpop.f32.mrb[19].mxu0  ;;  %v3066_v36 = vsel %vm3065_vm0, %v3512_v31, -inf }
 0x30d   :  { %3067 = vmax.xlane.f32.xlu0 %v3066_v36  ;;  %v3089_v20 = vsel %vm3065_vm0, %v3514_v33, -inf }
 0x311   :  { %3090 = vmax.xlane.f32.xlu0 %v3089_v20 }
 0x39a   :  { %v3068_v37 = vpop.xlane.xlu0 %3067 }
 0x39b   :  { %vm3069_vm1 = vcmp.eq.f32.partialorder %v3066_v36, %v3068_v37 }
 0x39c   :  { %v3070_v38 = vsel %vm3069_vm1, %v3064_v28, 128 }
 0x39d   :  { %v3072_v39 = vshra.s32 %v3070_v38, 16  ;;  %v3071_v44 = vand.u32 65535, %v3070_v38 }
 0x39e   :  { %v3091_v40 = vpop.xlane.xlu0 %3090 }
 0x39f   :  { %vm3092_vm2 = vcmp.eq.f32.partialorder %v3089_v20, %v3091_v40  ;;  %v3074_v41 = vcvt.s32.f32 %v3072_v39  ;;  %v3073_v49 = vcvt.s32.f32 %v3071_v44 }
 0x3a0   :  { %v3093_v48 = vsel %vm3092_vm2, %v3064_v28, 128 }
 0x3a1   :  { %3075 = vmin.xlane.f32.xlu1 %v3074_v41  ;;  %v3095_v42 = vshra.s32 %v3093_v48, 16  ;;  %v3094_v45 = vand.u32 65535, %v3093_v48 }
 0x3a3   :  { %v3097_v43 = vcvt.s32.f32 %v3095_v42  ;;  %v3096_v1 = vcvt.s32.f32 %v3094_v45 }
 0x3a5   :  { %3098 = vmin.xlane.f32.xlu1 %v3097_v43 }
 0x42e   :  { %v3076_v46 = vpop.xlane.xlu1 %3075 }
 0x42f   :  { %vm3077_vm3 = vcmp.eq.f32.partialorder %v3074_v41, %v3076_v46  ;;  %v3082_v0 = vcvt.f32.s32 %v3076_v46 }
 0x430   :  { %v3078_v47 = vsel %vm3077_vm3, %v3073_v49, inf }
 0x431   :  { %3079 = vmin.xlane.f32.xlu0 %v3078_v47  ;;  %v3083_v52 = vshll.u32 %v3082_v0, 16 }
 0x432   :  { %v3099_v2 = vpop.xlane.xlu1 %3098 }
 0x433   :  { %vm3100_vm4 = vcmp.eq.f32.partialorder %v3097_v43, %v3099_v2  ;;  %v3105_v53 = vcvt.f32.s32 %v3099_v2 }
 0x434   :  { %v3101_v50 = vsel %vm3100_vm4, %v3096_v1, inf }
 0x435   :  { %3102 = vmin.xlane.f32.xlu1 %v3101_v50  ;;  %v3106_v57 = vshll.u32 %v3105_v53, 16 }
 0x4be   :  { %v3080_v51 = vpop.xlane.xlu0 %3079 }
 0x4bf   :  { %v3081_v54 = vcvt.f32.s32 %v3080_v51 }
 0x4c1   :  { %v3084_v55 = vadd.s32 %v3083_v52, %v3081_v54 }
 0x4c2   :  { %v3103_v56 = vpop.xlane.xlu1 %3102 }
 0x4c3   :  { %v3085_v58 = vcvt.s32.f32 %v3084_v55  ;;  %v3104_v59 = vcvt.f32.s32 %v3103_v56 }
 0x4c5   :  { %v3107_v60 = vadd.s32 %v3106_v57, %v3104_v59  ;;  %v3087_v61 = vsel %vm3086_vm5, %v3085_v58, %v3512_v31 }
 0x4c6   :  { %3088 = vst [vmem:[#allocation8] sm:$0xff] %v3087_v61 }
 0x4c7   :  { %v3108_v62 = vcvt.s32.f32 %v3107_v60 }
 0x4c9   :  { %v3109_v3 = vsel %vm3086_vm5, %v3108_v62, %v3514_v33 }
 0x4ca   :  { %3110 = vst [vmem:[#allocation8 + $0x8] sm:$0xff] %v3109_v3 }
 0x4cb   :  { %4010 = shalt.err (!%p4007_p0)
}
 0x4cc   :  { %s4011_s6 = scalar_lea.hbm %s4159_s4, 256 }
 0x4cd   :  { %p4012_p1 = scmp.ne.s32.totalorder %s4159_s4, %s4011_s6  ;;  %p4015_p2 = scmp.lt.u32.totalorder %s4011_s6, %s4159_s4 }
 0x4cf   :  { %p4017_p3 = pnand %p4015_p2, %p4012_p1 }
 0x4d1   :  { %4020 = shalt.err (!%p4017_p3)
}
 0x4d2   :  { %3120 = dma.vmem_to_hbm [thread:$0]  %s3118_s28, 256, %s4159_s4, [#allocation4]  }
 0x4d3   :  { %4025 = dma.done.wait [#allocation4], 256  }
 0x4d4   :  { %4026 = vsyncadd [#allocation4], 4294967040 }
 0x4d5   :  { %3124 = vsyncpa [#allocation3], 1 }
 0x4d6   :  { %3125 = vsyncpa [#allocation6], 1 }
 0x4d7   :  { %3126 = vsyncpa [#allocation4], 1 }

</bundles_post_ra>
